<compile_context>
chip_gen: v5e
topology: v5e:2x2
jax: 0.10.0
libtpu: 0.0.40
codegen_flags: <defaults>
</compile_context>

<pallas_src>
import functools
import math

import jax
import jax.numpy as jnp
from jax import lax
from jax.experimental import pallas as pl
from jax.experimental.pallas import tpu as pltpu


def _cross_attention_kernel(x_ref, y_ref, wq_ref, wkv_ref, wp_ref, bp_ref, o_ref,
                            *, num_heads, scale):
    # One batch element per grid point; everything resident in VMEM.
    x = x_ref[0].astype(jnp.bfloat16)        # (N, C)
    y = y_ref[0].astype(jnp.bfloat16)        # (M, C)
    wq = wq_ref[...]                         # (C, C)   bf16
    wkv = wkv_ref[...]                       # (C, 2C)  bf16
    wp = wp_ref[...]                         # (C, C)   bf16

    n, c = x.shape
    dh = c // num_heads

    # Fused input projections: bf16 MXU operands, f32 accumulation.
    q = jnp.dot(x, wq, preferred_element_type=jnp.float32)      # (N, C)  f32
    kv = jnp.dot(y, wkv, preferred_element_type=jnp.float32)    # (M, 2C) f32
    k = kv[:, :c]                                               # (M, C)
    v = kv[:, c:]                                               # (M, C)

    # Output accumulator seeded with the projection bias; per-head outputs are
    # folded straight into the output projection (split-K accumulate, no concat).
    acc = jnp.broadcast_to(bp_ref[...], (n, c)).astype(jnp.float32)

    for h in range(num_heads):               # static unroll, num_heads is small
        lo, hi = h * dh, (h + 1) * dh
        qh = q[:, lo:hi].astype(jnp.bfloat16)    # (N, Dh)
        kh = k[:, lo:hi].astype(jnp.bfloat16)    # (M, Dh)
        vh = v[:, lo:hi].astype(jnp.bfloat16)    # (M, Dh)

        # scores = scale * qh @ kh^T  (contract on head_dim; no explicit transpose)
        s = lax.dot_general(qh, kh, (((1,), (1,)), ((), ())),
                            preferred_element_type=jnp.float32) * scale  # (N, M) f32

        m = jnp.max(s, axis=-1, keepdims=True)
        p = jnp.exp(s - m)
        p = p * pl.reciprocal(jnp.sum(p, axis=-1, keepdims=True), approx=True)

        oh = jnp.dot(p.astype(jnp.bfloat16), vh,
                     preferred_element_type=jnp.float32)                 # (N, Dh) f32

        # out = sum_h  o_h @ Wproj[h*Dh:(h+1)*Dh, :]  (+ bias already in acc)
        acc = acc + jnp.dot(oh.astype(jnp.bfloat16), wp[lo:hi, :],
                            preferred_element_type=jnp.float32)

    o_ref[0] = acc.astype(o_ref.dtype)


def cross_attention_forward(x, y, wq, wkv, wproj, bproj, *, num_heads):
    """x: (B, N, C) query input, y: (B, M, C) key/value input -> (B, N, C)."""
    B, N, C = x.shape
    M = y.shape[1]
    assert C % num_heads == 0, "dim should be divisible by num_heads"
    scale = (C // num_heads) ** -0.5

    # Ship weights in bf16 (MXU operand dtype) -> halves weight DMA bytes.
    wq_bf = wq.astype(jnp.bfloat16)
    wkv_bf = wkv.astype(jnp.bfloat16)
    wp_bf = wproj.astype(jnp.bfloat16)
    bp_row = bproj.reshape(1, C).astype(jnp.float32)

    kernel = functools.partial(_cross_attention_kernel,
                               num_heads=num_heads, scale=scale)

    return pl.pallas_call(
        kernel,
        out_shape=jax.ShapeDtypeStruct((B, N, C), jnp.float32),
        grid_spec=pltpu.PrefetchScalarGridSpec(
            num_scalar_prefetch=0,
            grid=(B,),
            in_specs=[
                pl.BlockSpec((1, N, C), lambda b: (b, 0, 0)),      # x
                pl.BlockSpec((1, M, C), lambda b: (b, 0, 0)),      # y
                pl.BlockSpec((C, C), lambda b: (0, 0)),            # Wq
                pl.BlockSpec((C, 2 * C), lambda b: (0, 0)),        # Wkv
                pl.BlockSpec((C, C), lambda b: (0, 0)),            # Wproj
                pl.BlockSpec((1, C), lambda b: (0, 0)),            # b_proj
            ],
            out_specs=pl.BlockSpec((1, N, C), lambda b: (b, 0, 0)),
        ),
        compiler_params=pltpu.CompilerParams(
            dimension_semantics=("parallel",),   # batch split across TCs (v7x)
        ),
    )(x.astype(jnp.float32), y.astype(jnp.float32), wq_bf, wkv_bf, wp_bf, bp_row)


def _reference(x, y, wq, wkv, wproj, bproj, *, num_heads):
    """Pure-JAX f32 reference matching the PyTorch CrossAttention.forward."""
    B, N, C = x.shape
    M = y.shape[1]
    dh = C // num_heads
    scale = dh ** -0.5
    q = x @ wq                                   # (B, N, C)
    kv = y @ wkv                                 # (B, M, 2C)
    k, v = kv[..., :C], kv[..., C:]
    q = q.reshape(B, N, num_heads, dh).transpose(0, 2, 1, 3) * scale
    k = k.reshape(B, M, num_heads, dh).transpose(0, 2, 1, 3)
    v = v.reshape(B, M, num_heads, dh).transpose(0, 2, 1, 3)
    attn = jax.nn.softmax(q @ jnp.swapaxes(k, -1, -2), axis=-1)
    o = (attn @ v).transpose(0, 2, 1, 3).reshape(B, N, C)
    return o @ wproj + bproj


if __name__ == "__main__":
    B, N, M, C = 2, 16, 8, 64
    num_heads = 8                                   # head_dim = 8

    key = jax.random.PRNGKey(0)
    kx, ky, kq, kkv, kp, kb = jax.random.split(key, 6)

    x = jax.random.normal(kx, (B, N, C), jnp.float32)
    y = jax.random.normal(ky, (B, M, C), jnp.float32)
    # Weights stored (in_features, out_features) == PyTorch nn.Linear weight.T
    wq = jax.random.normal(kq, (C, C), jnp.float32) / math.sqrt(C)
    wkv = jax.random.normal(kkv, (C, 2 * C), jnp.float32) / math.sqrt(C)
    wproj = jax.random.normal(kp, (C, C), jnp.float32) / math.sqrt(C)
    bproj = jax.random.normal(kb, (C,), jnp.float32) * 0.02

    out = cross_attention_forward(x, y, wq, wkv, wproj, bproj, num_heads=num_heads)
    jax.block_until_ready(out)

    ref = _reference(x, y, wq, wkv, wproj, bproj, num_heads=num_heads)
    assert out.shape == (B, N, C)
    # bf16 MXU operands + approx reciprocal => relaxed tolerance vs f32 reference
    assert jnp.allclose(out, ref, atol=3e-2, rtol=3e-2), float(jnp.max(jnp.abs(out - ref)))

    print("KERNEL_OK")
</pallas_src>

<mosaic_0001>
module attributes {stable_mosaic.version = 11 : i64} {
  func.func @_cross_attention_kernel(%arg0: i32, %arg1: memref<1x16x64xf32, #tpu.memory_space<vmem>>, %arg2: memref<1x8x64xf32, #tpu.memory_space<vmem>>, %arg3: memref<64x64xbf16, #tpu.memory_space<vmem>>, %arg4: memref<64x128xbf16, #tpu.memory_space<vmem>>, %arg5: memref<64x64xbf16, #tpu.memory_space<vmem>>, %arg6: memref<1x64xf32, #tpu.memory_space<vmem>>, %arg7: memref<1x16x64xf32, #tpu.memory_space<vmem>>) attributes {dimension_semantics = [#tpu.dimension_semantics<parallel>], iteration_bounds = array<i64: 2>, scalar_prefetch = 0 : i64, scratch_operands = 0 : i64, tpu.core_type = #tpu.core_type<tc>, window_params = [{transform_indices = @transform_0, window_bounds = array<i64: 1, 16, 64>}, {transform_indices = @transform_1, window_bounds = array<i64: 1, 8, 64>}, {pipeline_mode = #tpu.pipeline_mode<synchronous>, transform_indices = @transform_2, window_bounds = array<i64: 64, 64>}, {pipeline_mode = #tpu.pipeline_mode<synchronous>, transform_indices = @transform_3, window_bounds = array<i64: 64, 128>}, {pipeline_mode = #tpu.pipeline_mode<synchronous>, transform_indices = @transform_4, window_bounds = array<i64: 64, 64>}, {pipeline_mode = #tpu.pipeline_mode<synchronous>, transform_indices = @transform_5, window_bounds = array<i64: 1, 64>}, {transform_indices = @transform_6, window_bounds = array<i64: 1, 16, 64>}]} {
    %c0 = arith.constant 0 : index
    %c0_0 = arith.constant 0 : index
    %c0_1 = arith.constant 0 : index
    %0 = vector.load %arg1[%c0, %c0_0, %c0_1] : memref<1x16x64xf32, #tpu.memory_space<vmem>>, vector<1x16x64xf32>
    %1 = vector.shape_cast %0 : vector<1x16x64xf32> to vector<16x64xf32>
    %2 = arith.truncf %1 : vector<16x64xf32> to vector<16x64xbf16>
    %c0_2 = arith.constant 0 : index
    %c0_3 = arith.constant 0 : index
    %c0_4 = arith.constant 0 : index
    %3 = vector.load %arg2[%c0_2, %c0_3, %c0_4] : memref<1x8x64xf32, #tpu.memory_space<vmem>>, vector<1x8x64xf32>
    %4 = vector.shape_cast %3 : vector<1x8x64xf32> to vector<8x64xf32>
    %5 = arith.truncf %4 : vector<8x64xf32> to vector<8x64xbf16>
    %c0_5 = arith.constant 0 : index
    %c0_6 = arith.constant 0 : index
    %6 = vector.load %arg3[%c0_5, %c0_6] : memref<64x64xbf16, #tpu.memory_space<vmem>>, vector<64x64xbf16>
    %c0_7 = arith.constant 0 : index
    %c0_8 = arith.constant 0 : index
    %7 = vector.load %arg4[%c0_7, %c0_8] : memref<64x128xbf16, #tpu.memory_space<vmem>>, vector<64x128xbf16>
    %c0_9 = arith.constant 0 : index
    %c0_10 = arith.constant 0 : index
    %8 = vector.load %arg5[%c0_9, %c0_10] : memref<64x64xbf16, #tpu.memory_space<vmem>>, vector<64x64xbf16>
    %cst = arith.constant dense<0.000000e+00> : vector<16x64xf32>
    %9 = tpu.matmul %2, %6, %cst {dimension_numbers = #tpu.dot_dimension_numbers<[1], [0], [0], [1], [0, 0, 1, 1], [], []>} : vector<16x64xbf16>, vector<64x64xbf16>, vector<16x64xf32> -> vector<16x64xf32>
    %cst_11 = arith.constant dense<0.000000e+00> : vector<8x128xf32>
    %10 = tpu.matmul %5, %7, %cst_11 {dimension_numbers = #tpu.dot_dimension_numbers<[1], [0], [0], [1], [0, 0, 1, 1], [], []>} : vector<8x64xbf16>, vector<64x128xbf16>, vector<8x128xf32> -> vector<8x128xf32>
    %11 = vector.extract_strided_slice %10 {offsets = [0, 0], sizes = [8, 64], strides = [1, 1]} : vector<8x128xf32> to vector<8x64xf32>
    %12 = vector.extract_strided_slice %10 {offsets = [0, 64], sizes = [8, 64], strides = [1, 1]} : vector<8x128xf32> to vector<8x64xf32>
    %c0_12 = arith.constant 0 : index
    %c0_13 = arith.constant 0 : index
    %13 = vector.load %arg6[%c0_12, %c0_13] : memref<1x64xf32, #tpu.memory_space<vmem>>, vector<1x64xf32>
    %14 = vector.shape_cast %13 : vector<1x64xf32> to vector<1x64xf32>
    %15 = vector.broadcast %14 : vector<1x64xf32> to vector<16x64xf32>
    %16 = vector.extract_strided_slice %9 {offsets = [0, 0], sizes = [16, 8], strides = [1, 1]} : vector<16x64xf32> to vector<16x8xf32>
    %17 = arith.truncf %16 : vector<16x8xf32> to vector<16x8xbf16>
    %18 = vector.extract_strided_slice %11 {offsets = [0, 0], sizes = [8, 8], strides = [1, 1]} : vector<8x64xf32> to vector<8x8xf32>
    %19 = arith.truncf %18 : vector<8x8xf32> to vector<8x8xbf16>
    %20 = vector.extract_strided_slice %12 {offsets = [0, 0], sizes = [8, 8], strides = [1, 1]} : vector<8x64xf32> to vector<8x8xf32>
    %21 = arith.truncf %20 : vector<8x8xf32> to vector<8x8xbf16>
    %cst_14 = arith.constant dense<0.000000e+00> : vector<16x8xf32>
    %22 = tpu.matmul %17, %19, %cst_14 {dimension_numbers = #tpu.dot_dimension_numbers<[1], [1], [0], [0], [0, 0, 1, 0], [], []>} : vector<16x8xbf16>, vector<8x8xbf16>, vector<16x8xf32> -> vector<16x8xf32>
    %cst_15 = arith.constant 0.353553385 : f32
    %23 = vector.broadcast %cst_15 : f32 to vector<16x8xf32>
    %24 = arith.mulf %22, %23 : vector<16x8xf32>
    %cst_16 = arith.constant dense<0xFF800000> : vector<16xf32>
    %25 = vector.multi_reduction <maximumf>, %24, %cst_16 [1] : vector<16x8xf32> to vector<16xf32>
    %26 = vector.shape_cast %25 : vector<16xf32> to vector<16x1xf32>
    %27 = vector.broadcast %26 : vector<16x1xf32> to vector<16x8xf32>
    %28 = arith.subf %24, %27 : vector<16x8xf32>
    %29 = math.exp %28 : vector<16x8xf32>
    %cst_17 = arith.constant dense<0.000000e+00> : vector<16xf32>
    %30 = vector.multi_reduction <add>, %29, %cst_17 [1] : vector<16x8xf32> to vector<16xf32>
    %31 = vector.shape_cast %30 : vector<16xf32> to vector<16x1xf32>
    %32 = tpu.reciprocal %31 {approx = true} : vector<16x1xf32> -> vector<16x1xf32>
    %33 = vector.broadcast %32 : vector<16x1xf32> to vector<16x8xf32>
    %34 = arith.mulf %29, %33 : vector<16x8xf32>
    %35 = arith.truncf %34 : vector<16x8xf32> to vector<16x8xbf16>
    %cst_18 = arith.constant dense<0.000000e+00> : vector<16x8xf32>
    %36 = tpu.matmul %35, %21, %cst_18 {dimension_numbers = #tpu.dot_dimension_numbers<[1], [0], [0], [1], [0, 0, 1, 1], [], []>} : vector<16x8xbf16>, vector<8x8xbf16>, vector<16x8xf32> -> vector<16x8xf32>
    %37 = arith.truncf %36 : vector<16x8xf32> to vector<16x8xbf16>
    %38 = vector.extract_strided_slice %8 {offsets = [0, 0], sizes = [8, 64], strides = [1, 1]} : vector<64x64xbf16> to vector<8x64xbf16>
    %cst_19 = arith.constant dense<0.000000e+00> : vector<16x64xf32>
    %39 = tpu.matmul %37, %38, %cst_19 {dimension_numbers = #tpu.dot_dimension_numbers<[1], [0], [0], [1], [0, 0, 1, 1], [], []>} : vector<16x8xbf16>, vector<8x64xbf16>, vector<16x64xf32> -> vector<16x64xf32>
    %40 = arith.addf %15, %39 : vector<16x64xf32>
    %41 = vector.extract_strided_slice %9 {offsets = [0, 8], sizes = [16, 8], strides = [1, 1]} : vector<16x64xf32> to vector<16x8xf32>
    %42 = arith.truncf %41 : vector<16x8xf32> to vector<16x8xbf16>
    %43 = vector.extract_strided_slice %11 {offsets = [0, 8], sizes = [8, 8], strides = [1, 1]} : vector<8x64xf32> to vector<8x8xf32>
    %44 = arith.truncf %43 : vector<8x8xf32> to vector<8x8xbf16>
    %45 = vector.extract_strided_slice %12 {offsets = [0, 8], sizes = [8, 8], strides = [1, 1]} : vector<8x64xf32> to vector<8x8xf32>
    %46 = arith.truncf %45 : vector<8x8xf32> to vector<8x8xbf16>
    %cst_20 = arith.constant dense<0.000000e+00> : vector<16x8xf32>
    %47 = tpu.matmul %42, %44, %cst_20 {dimension_numbers = #tpu.dot_dimension_numbers<[1], [1], [0], [0], [0, 0, 1, 0], [], []>} : vector<16x8xbf16>, vector<8x8xbf16>, vector<16x8xf32> -> vector<16x8xf32>
    %cst_21 = arith.constant 0.353553385 : f32
    %48 = vector.broadcast %cst_21 : f32 to vector<16x8xf32>
    %49 = arith.mulf %47, %48 : vector<16x8xf32>
    %cst_22 = arith.constant dense<0xFF800000> : vector<16xf32>
    %50 = vector.multi_reduction <maximumf>, %49, %cst_22 [1] : vector<16x8xf32> to vector<16xf32>
    %51 = vector.shape_cast %50 : vector<16xf32> to vector<16x1xf32>
    %52 = vector.broadcast %51 : vector<16x1xf32> to vector<16x8xf32>
    %53 = arith.subf %49, %52 : vector<16x8xf32>
    %54 = math.exp %53 : vector<16x8xf32>
    %cst_23 = arith.constant dense<0.000000e+00> : vector<16xf32>
    %55 = vector.multi_reduction <add>, %54, %cst_23 [1] : vector<16x8xf32> to vector<16xf32>
    %56 = vector.shape_cast %55 : vector<16xf32> to vector<16x1xf32>
    %57 = tpu.reciprocal %56 {approx = true} : vector<16x1xf32> -> vector<16x1xf32>
    %58 = vector.broadcast %57 : vector<16x1xf32> to vector<16x8xf32>
    %59 = arith.mulf %54, %58 : vector<16x8xf32>
    %60 = arith.truncf %59 : vector<16x8xf32> to vector<16x8xbf16>
    %cst_24 = arith.constant dense<0.000000e+00> : vector<16x8xf32>
    %61 = tpu.matmul %60, %46, %cst_24 {dimension_numbers = #tpu.dot_dimension_numbers<[1], [0], [0], [1], [0, 0, 1, 1], [], []>} : vector<16x8xbf16>, vector<8x8xbf16>, vector<16x8xf32> -> vector<16x8xf32>
    %62 = arith.truncf %61 : vector<16x8xf32> to vector<16x8xbf16>
    %63 = vector.extract_strided_slice %8 {offsets = [8, 0], sizes = [8, 64], strides = [1, 1]} : vector<64x64xbf16> to vector<8x64xbf16>
    %cst_25 = arith.constant dense<0.000000e+00> : vector<16x64xf32>
    %64 = tpu.matmul %62, %63, %cst_25 {dimension_numbers = #tpu.dot_dimension_numbers<[1], [0], [0], [1], [0, 0, 1, 1], [], []>} : vector<16x8xbf16>, vector<8x64xbf16>, vector<16x64xf32> -> vector<16x64xf32>
    %65 = arith.addf %40, %64 : vector<16x64xf32>
    %66 = vector.extract_strided_slice %9 {offsets = [0, 16], sizes = [16, 8], strides = [1, 1]} : vector<16x64xf32> to vector<16x8xf32>
    %67 = arith.truncf %66 : vector<16x8xf32> to vector<16x8xbf16>
    %68 = vector.extract_strided_slice %11 {offsets = [0, 16], sizes = [8, 8], strides = [1, 1]} : vector<8x64xf32> to vector<8x8xf32>
    %69 = arith.truncf %68 : vector<8x8xf32> to vector<8x8xbf16>
    %70 = vector.extract_strided_slice %12 {offsets = [0, 16], sizes = [8, 8], strides = [1, 1]} : vector<8x64xf32> to vector<8x8xf32>
    %71 = arith.truncf %70 : vector<8x8xf32> to vector<8x8xbf16>
    %cst_26 = arith.constant dense<0.000000e+00> : vector<16x8xf32>
    %72 = tpu.matmul %67, %69, %cst_26 {dimension_numbers = #tpu.dot_dimension_numbers<[1], [1], [0], [0], [0, 0, 1, 0], [], []>} : vector<16x8xbf16>, vector<8x8xbf16>, vector<16x8xf32> -> vector<16x8xf32>
    %cst_27 = arith.constant 0.353553385 : f32
    %73 = vector.broadcast %cst_27 : f32 to vector<16x8xf32>
    %74 = arith.mulf %72, %73 : vector<16x8xf32>
    %cst_28 = arith.constant dense<0xFF800000> : vector<16xf32>
    %75 = vector.multi_reduction <maximumf>, %74, %cst_28 [1] : vector<16x8xf32> to vector<16xf32>
    %76 = vector.shape_cast %75 : vector<16xf32> to vector<16x1xf32>
    %77 = vector.broadcast %76 : vector<16x1xf32> to vector<16x8xf32>
    %78 = arith.subf %74, %77 : vector<16x8xf32>
    %79 = math.exp %78 : vector<16x8xf32>
    %cst_29 = arith.constant dense<0.000000e+00> : vector<16xf32>
    %80 = vector.multi_reduction <add>, %79, %cst_29 [1] : vector<16x8xf32> to vector<16xf32>
    %81 = vector.shape_cast %80 : vector<16xf32> to vector<16x1xf32>
    %82 = tpu.reciprocal %81 {approx = true} : vector<16x1xf32> -> vector<16x1xf32>
    %83 = vector.broadcast %82 : vector<16x1xf32> to vector<16x8xf32>
    %84 = arith.mulf %79, %83 : vector<16x8xf32>
    %85 = arith.truncf %84 : vector<16x8xf32> to vector<16x8xbf16>
    %cst_30 = arith.constant dense<0.000000e+00> : vector<16x8xf32>
    %86 = tpu.matmul %85, %71, %cst_30 {dimension_numbers = #tpu.dot_dimension_numbers<[1], [0], [0], [1], [0, 0, 1, 1], [], []>} : vector<16x8xbf16>, vector<8x8xbf16>, vector<16x8xf32> -> vector<16x8xf32>
    %87 = arith.truncf %86 : vector<16x8xf32> to vector<16x8xbf16>
    %88 = vector.extract_strided_slice %8 {offsets = [16, 0], sizes = [8, 64], strides = [1, 1]} : vector<64x64xbf16> to vector<8x64xbf16>
    %cst_31 = arith.constant dense<0.000000e+00> : vector<16x64xf32>
    %89 = tpu.matmul %87, %88, %cst_31 {dimension_numbers = #tpu.dot_dimension_numbers<[1], [0], [0], [1], [0, 0, 1, 1], [], []>} : vector<16x8xbf16>, vector<8x64xbf16>, vector<16x64xf32> -> vector<16x64xf32>
    %90 = arith.addf %65, %89 : vector<16x64xf32>
    %91 = vector.extract_strided_slice %9 {offsets = [0, 24], sizes = [16, 8], strides = [1, 1]} : vector<16x64xf32> to vector<16x8xf32>
    %92 = arith.truncf %91 : vector<16x8xf32> to vector<16x8xbf16>
    %93 = vector.extract_strided_slice %11 {offsets = [0, 24], sizes = [8, 8], strides = [1, 1]} : vector<8x64xf32> to vector<8x8xf32>
    %94 = arith.truncf %93 : vector<8x8xf32> to vector<8x8xbf16>
    %95 = vector.extract_strided_slice %12 {offsets = [0, 24], sizes = [8, 8], strides = [1, 1]} : vector<8x64xf32> to vector<8x8xf32>
    %96 = arith.truncf %95 : vector<8x8xf32> to vector<8x8xbf16>
    %cst_32 = arith.constant dense<0.000000e+00> : vector<16x8xf32>
    %97 = tpu.matmul %92, %94, %cst_32 {dimension_numbers = #tpu.dot_dimension_numbers<[1], [1], [0], [0], [0, 0, 1, 0], [], []>} : vector<16x8xbf16>, vector<8x8xbf16>, vector<16x8xf32> -> vector<16x8xf32>
    %cst_33 = arith.constant 0.353553385 : f32
    %98 = vector.broadcast %cst_33 : f32 to vector<16x8xf32>
    %99 = arith.mulf %97, %98 : vector<16x8xf32>
    %cst_34 = arith.constant dense<0xFF800000> : vector<16xf32>
    %100 = vector.multi_reduction <maximumf>, %99, %cst_34 [1] : vector<16x8xf32> to vector<16xf32>
    %101 = vector.shape_cast %100 : vector<16xf32> to vector<16x1xf32>
    %102 = vector.broadcast %101 : vector<16x1xf32> to vector<16x8xf32>
    %103 = arith.subf %99, %102 : vector<16x8xf32>
    %104 = math.exp %103 : vector<16x8xf32>
    %cst_35 = arith.constant dense<0.000000e+00> : vector<16xf32>
    %105 = vector.multi_reduction <add>, %104, %cst_35 [1] : vector<16x8xf32> to vector<16xf32>
    %106 = vector.shape_cast %105 : vector<16xf32> to vector<16x1xf32>
    %107 = tpu.reciprocal %106 {approx = true} : vector<16x1xf32> -> vector<16x1xf32>
    %108 = vector.broadcast %107 : vector<16x1xf32> to vector<16x8xf32>
    %109 = arith.mulf %104, %108 : vector<16x8xf32>
    %110 = arith.truncf %109 : vector<16x8xf32> to vector<16x8xbf16>
    %cst_36 = arith.constant dense<0.000000e+00> : vector<16x8xf32>
    %111 = tpu.matmul %110, %96, %cst_36 {dimension_numbers = #tpu.dot_dimension_numbers<[1], [0], [0], [1], [0, 0, 1, 1], [], []>} : vector<16x8xbf16>, vector<8x8xbf16>, vector<16x8xf32> -> vector<16x8xf32>
    %112 = arith.truncf %111 : vector<16x8xf32> to vector<16x8xbf16>
    %113 = vector.extract_strided_slice %8 {offsets = [24, 0], sizes = [8, 64], strides = [1, 1]} : vector<64x64xbf16> to vector<8x64xbf16>
    %cst_37 = arith.constant dense<0.000000e+00> : vector<16x64xf32>
    %114 = tpu.matmul %112, %113, %cst_37 {dimension_numbers = #tpu.dot_dimension_numbers<[1], [0], [0], [1], [0, 0, 1, 1], [], []>} : vector<16x8xbf16>, vector<8x64xbf16>, vector<16x64xf32> -> vector<16x64xf32>
    %115 = arith.addf %90, %114 : vector<16x64xf32>
    %116 = vector.extract_strided_slice %9 {offsets = [0, 32], sizes = [16, 8], strides = [1, 1]} : vector<16x64xf32> to vector<16x8xf32>
    %117 = arith.truncf %116 : vector<16x8xf32> to vector<16x8xbf16>
    %118 = vector.extract_strided_slice %11 {offsets = [0, 32], sizes = [8, 8], strides = [1, 1]} : vector<8x64xf32> to vector<8x8xf32>
    %119 = arith.truncf %118 : vector<8x8xf32> to vector<8x8xbf16>
    %120 = vector.extract_strided_slice %12 {offsets = [0, 32], sizes = [8, 8], strides = [1, 1]} : vector<8x64xf32> to vector<8x8xf32>
    %121 = arith.truncf %120 : vector<8x8xf32> to vector<8x8xbf16>
    %cst_38 = arith.constant dense<0.000000e+00> : vector<16x8xf32>
    %122 = tpu.matmul %117, %119, %cst_38 {dimension_numbers = #tpu.dot_dimension_numbers<[1], [1], [0], [0], [0, 0, 1, 0], [], []>} : vector<16x8xbf16>, vector<8x8xbf16>, vector<16x8xf32> -> vector<16x8xf32>
    %cst_39 = arith.constant 0.353553385 : f32
    %123 = vector.broadcast %cst_39 : f32 to vector<16x8xf32>
    %124 = arith.mulf %122, %123 : vector<16x8xf32>
    %cst_40 = arith.constant dense<0xFF800000> : vector<16xf32>
    %125 = vector.multi_reduction <maximumf>, %124, %cst_40 [1] : vector<16x8xf32> to vector<16xf32>
    %126 = vector.shape_cast %125 : vector<16xf32> to vector<16x1xf32>
    %127 = vector.broadcast %126 : vector<16x1xf32> to vector<16x8xf32>
    %128 = arith.subf %124, %127 : vector<16x8xf32>
    %129 = math.exp %128 : vector<16x8xf32>
    %cst_41 = arith.constant dense<0.000000e+00> : vector<16xf32>
    %130 = vector.multi_reduction <add>, %129, %cst_41 [1] : vector<16x8xf32> to vector<16xf32>
    %131 = vector.shape_cast %130 : vector<16xf32> to vector<16x1xf32>
    %132 = tpu.reciprocal %131 {approx = true} : vector<16x1xf32> -> vector<16x1xf32>
    %133 = vector.broadcast %132 : vector<16x1xf32> to vector<16x8xf32>
    %134 = arith.mulf %129, %133 : vector<16x8xf32>
    %135 = arith.truncf %134 : vector<16x8xf32> to vector<16x8xbf16>
    %cst_42 = arith.constant dense<0.000000e+00> : vector<16x8xf32>
    %136 = tpu.matmul %135, %121, %cst_42 {dimension_numbers = #tpu.dot_dimension_numbers<[1], [0], [0], [1], [0, 0, 1, 1], [], []>} : vector<16x8xbf16>, vector<8x8xbf16>, vector<16x8xf32> -> vector<16x8xf32>
    %137 = arith.truncf %136 : vector<16x8xf32> to vector<16x8xbf16>
    %138 = vector.extract_strided_slice %8 {offsets = [32, 0], sizes = [8, 64], strides = [1, 1]} : vector<64x64xbf16> to vector<8x64xbf16>
    %cst_43 = arith.constant dense<0.000000e+00> : vector<16x64xf32>
    %139 = tpu.matmul %137, %138, %cst_43 {dimension_numbers = #tpu.dot_dimension_numbers<[1], [0], [0], [1], [0, 0, 1, 1], [], []>} : vector<16x8xbf16>, vector<8x64xbf16>, vector<16x64xf32> -> vector<16x64xf32>
    %140 = arith.addf %115, %139 : vector<16x64xf32>
    %141 = vector.extract_strided_slice %9 {offsets = [0, 40], sizes = [16, 8], strides = [1, 1]} : vector<16x64xf32> to vector<16x8xf32>
    %142 = arith.truncf %141 : vector<16x8xf32> to vector<16x8xbf16>
    %143 = vector.extract_strided_slice %11 {offsets = [0, 40], sizes = [8, 8], strides = [1, 1]} : vector<8x64xf32> to vector<8x8xf32>
    %144 = arith.truncf %143 : vector<8x8xf32> to vector<8x8xbf16>
    %145 = vector.extract_strided_slice %12 {offsets = [0, 40], sizes = [8, 8], strides = [1, 1]} : vector<8x64xf32> to vector<8x8xf32>
    %146 = arith.truncf %145 : vector<8x8xf32> to vector<8x8xbf16>
    %cst_44 = arith.constant dense<0.000000e+00> : vector<16x8xf32>
    %147 = tpu.matmul %142, %144, %cst_44 {dimension_numbers = #tpu.dot_dimension_numbers<[1], [1], [0], [0], [0, 0, 1, 0], [], []>} : vector<16x8xbf16>, vector<8x8xbf16>, vector<16x8xf32> -> vector<16x8xf32>
    %cst_45 = arith.constant 0.353553385 : f32
    %148 = vector.broadcast %cst_45 : f32 to vector<16x8xf32>
    %149 = arith.mulf %147, %148 : vector<16x8xf32>
    %cst_46 = arith.constant dense<0xFF800000> : vector<16xf32>
    %150 = vector.multi_reduction <maximumf>, %149, %cst_46 [1] : vector<16x8xf32> to vector<16xf32>
    %151 = vector.shape_cast %150 : vector<16xf32> to vector<16x1xf32>
    %152 = vector.broadcast %151 : vector<16x1xf32> to vector<16x8xf32>
    %153 = arith.subf %149, %152 : vector<16x8xf32>
    %154 = math.exp %153 : vector<16x8xf32>
    %cst_47 = arith.constant dense<0.000000e+00> : vector<16xf32>
    %155 = vector.multi_reduction <add>, %154, %cst_47 [1] : vector<16x8xf32> to vector<16xf32>
    %156 = vector.shape_cast %155 : vector<16xf32> to vector<16x1xf32>
    %157 = tpu.reciprocal %156 {approx = true} : vector<16x1xf32> -> vector<16x1xf32>
    %158 = vector.broadcast %157 : vector<16x1xf32> to vector<16x8xf32>
    %159 = arith.mulf %154, %158 : vector<16x8xf32>
    %160 = arith.truncf %159 : vector<16x8xf32> to vector<16x8xbf16>
    %cst_48 = arith.constant dense<0.000000e+00> : vector<16x8xf32>
    %161 = tpu.matmul %160, %146, %cst_48 {dimension_numbers = #tpu.dot_dimension_numbers<[1], [0], [0], [1], [0, 0, 1, 1], [], []>} : vector<16x8xbf16>, vector<8x8xbf16>, vector<16x8xf32> -> vector<16x8xf32>
    %162 = arith.truncf %161 : vector<16x8xf32> to vector<16x8xbf16>
    %163 = vector.extract_strided_slice %8 {offsets = [40, 0], sizes = [8, 64], strides = [1, 1]} : vector<64x64xbf16> to vector<8x64xbf16>
    %cst_49 = arith.constant dense<0.000000e+00> : vector<16x64xf32>
    %164 = tpu.matmul %162, %163, %cst_49 {dimension_numbers = #tpu.dot_dimension_numbers<[1], [0], [0], [1], [0, 0, 1, 1], [], []>} : vector<16x8xbf16>, vector<8x64xbf16>, vector<16x64xf32> -> vector<16x64xf32>
    %165 = arith.addf %140, %164 : vector<16x64xf32>
    %166 = vector.extract_strided_slice %9 {offsets = [0, 48], sizes = [16, 8], strides = [1, 1]} : vector<16x64xf32> to vector<16x8xf32>
    %167 = arith.truncf %166 : vector<16x8xf32> to vector<16x8xbf16>
    %168 = vector.extract_strided_slice %11 {offsets = [0, 48], sizes = [8, 8], strides = [1, 1]} : vector<8x64xf32> to vector<8x8xf32>
    %169 = arith.truncf %168 : vector<8x8xf32> to vector<8x8xbf16>
    %170 = vector.extract_strided_slice %12 {offsets = [0, 48], sizes = [8, 8], strides = [1, 1]} : vector<8x64xf32> to vector<8x8xf32>
    %171 = arith.truncf %170 : vector<8x8xf32> to vector<8x8xbf16>
    %cst_50 = arith.constant dense<0.000000e+00> : vector<16x8xf32>
    %172 = tpu.matmul %167, %169, %cst_50 {dimension_numbers = #tpu.dot_dimension_numbers<[1], [1], [0], [0], [0, 0, 1, 0], [], []>} : vector<16x8xbf16>, vector<8x8xbf16>, vector<16x8xf32> -> vector<16x8xf32>
    %cst_51 = arith.constant 0.353553385 : f32
    %173 = vector.broadcast %cst_51 : f32 to vector<16x8xf32>
    %174 = arith.mulf %172, %173 : vector<16x8xf32>
    %cst_52 = arith.constant dense<0xFF800000> : vector<16xf32>
    %175 = vector.multi_reduction <maximumf>, %174, %cst_52 [1] : vector<16x8xf32> to vector<16xf32>
    %176 = vector.shape_cast %175 : vector<16xf32> to vector<16x1xf32>
    %177 = vector.broadcast %176 : vector<16x1xf32> to vector<16x8xf32>
    %178 = arith.subf %174, %177 : vector<16x8xf32>
    %179 = math.exp %178 : vector<16x8xf32>
    %cst_53 = arith.constant dense<0.000000e+00> : vector<16xf32>
    %180 = vector.multi_reduction <add>, %179, %cst_53 [1] : vector<16x8xf32> to vector<16xf32>
    %181 = vector.shape_cast %180 : vector<16xf32> to vector<16x1xf32>
    %182 = tpu.reciprocal %181 {approx = true} : vector<16x1xf32> -> vector<16x1xf32>
    %183 = vector.broadcast %182 : vector<16x1xf32> to vector<16x8xf32>
    %184 = arith.mulf %179, %183 : vector<16x8xf32>
    %185 = arith.truncf %184 : vector<16x8xf32> to vector<16x8xbf16>
    %cst_54 = arith.constant dense<0.000000e+00> : vector<16x8xf32>
    %186 = tpu.matmul %185, %171, %cst_54 {dimension_numbers = #tpu.dot_dimension_numbers<[1], [0], [0], [1], [0, 0, 1, 1], [], []>} : vector<16x8xbf16>, vector<8x8xbf16>, vector<16x8xf32> -> vector<16x8xf32>
    %187 = arith.truncf %186 : vector<16x8xf32> to vector<16x8xbf16>
    %188 = vector.extract_strided_slice %8 {offsets = [48, 0], sizes = [8, 64], strides = [1, 1]} : vector<64x64xbf16> to vector<8x64xbf16>
    %cst_55 = arith.constant dense<0.000000e+00> : vector<16x64xf32>
    %189 = tpu.matmul %187, %188, %cst_55 {dimension_numbers = #tpu.dot_dimension_numbers<[1], [0], [0], [1], [0, 0, 1, 1], [], []>} : vector<16x8xbf16>, vector<8x64xbf16>, vector<16x64xf32> -> vector<16x64xf32>
    %190 = arith.addf %165, %189 : vector<16x64xf32>
    %191 = vector.extract_strided_slice %9 {offsets = [0, 56], sizes = [16, 8], strides = [1, 1]} : vector<16x64xf32> to vector<16x8xf32>
    %192 = arith.truncf %191 : vector<16x8xf32> to vector<16x8xbf16>
    %193 = vector.extract_strided_slice %11 {offsets = [0, 56], sizes = [8, 8], strides = [1, 1]} : vector<8x64xf32> to vector<8x8xf32>
    %194 = arith.truncf %193 : vector<8x8xf32> to vector<8x8xbf16>
    %195 = vector.extract_strided_slice %12 {offsets = [0, 56], sizes = [8, 8], strides = [1, 1]} : vector<8x64xf32> to vector<8x8xf32>
    %196 = arith.truncf %195 : vector<8x8xf32> to vector<8x8xbf16>
    %cst_56 = arith.constant dense<0.000000e+00> : vector<16x8xf32>
    %197 = tpu.matmul %192, %194, %cst_56 {dimension_numbers = #tpu.dot_dimension_numbers<[1], [1], [0], [0], [0, 0, 1, 0], [], []>} : vector<16x8xbf16>, vector<8x8xbf16>, vector<16x8xf32> -> vector<16x8xf32>
    %cst_57 = arith.constant 0.353553385 : f32
    %198 = vector.broadcast %cst_57 : f32 to vector<16x8xf32>
    %199 = arith.mulf %197, %198 : vector<16x8xf32>
    %cst_58 = arith.constant dense<0xFF800000> : vector<16xf32>
    %200 = vector.multi_reduction <maximumf>, %199, %cst_58 [1] : vector<16x8xf32> to vector<16xf32>
    %201 = vector.shape_cast %200 : vector<16xf32> to vector<16x1xf32>
    %202 = vector.broadcast %201 : vector<16x1xf32> to vector<16x8xf32>
    %203 = arith.subf %199, %202 : vector<16x8xf32>
    %204 = math.exp %203 : vector<16x8xf32>
    %cst_59 = arith.constant dense<0.000000e+00> : vector<16xf32>
    %205 = vector.multi_reduction <add>, %204, %cst_59 [1] : vector<16x8xf32> to vector<16xf32>
    %206 = vector.shape_cast %205 : vector<16xf32> to vector<16x1xf32>
    %207 = tpu.reciprocal %206 {approx = true} : vector<16x1xf32> -> vector<16x1xf32>
    %208 = vector.broadcast %207 : vector<16x1xf32> to vector<16x8xf32>
    %209 = arith.mulf %204, %208 : vector<16x8xf32>
    %210 = arith.truncf %209 : vector<16x8xf32> to vector<16x8xbf16>
    %cst_60 = arith.constant dense<0.000000e+00> : vector<16x8xf32>
    %211 = tpu.matmul %210, %196, %cst_60 {dimension_numbers = #tpu.dot_dimension_numbers<[1], [0], [0], [1], [0, 0, 1, 1], [], []>} : vector<16x8xbf16>, vector<8x8xbf16>, vector<16x8xf32> -> vector<16x8xf32>
    %212 = arith.truncf %211 : vector<16x8xf32> to vector<16x8xbf16>
    %213 = vector.extract_strided_slice %8 {offsets = [56, 0], sizes = [8, 64], strides = [1, 1]} : vector<64x64xbf16> to vector<8x64xbf16>
    %cst_61 = arith.constant dense<0.000000e+00> : vector<16x64xf32>
    %214 = tpu.matmul %212, %213, %cst_61 {dimension_numbers = #tpu.dot_dimension_numbers<[1], [0], [0], [1], [0, 0, 1, 1], [], []>} : vector<16x8xbf16>, vector<8x64xbf16>, vector<16x64xf32> -> vector<16x64xf32>
    %215 = arith.addf %190, %214 : vector<16x64xf32>
    %c0_62 = arith.constant 0 : index
    %c0_63 = arith.constant 0 : index
    %c0_64 = arith.constant 0 : index
    %216 = vector.load %arg7[%c0_62, %c0_63, %c0_64] : memref<1x16x64xf32, #tpu.memory_space<vmem>>, vector<1x16x64xf32>
    %217 = vector.shape_cast %216 : vector<1x16x64xf32> to vector<16x64xf32>
    %218 = vector.shape_cast %215 : vector<16x64xf32> to vector<1x16x64xf32>
    tpu.vector_store %arg7[%c0_62, %c0_63, %c0_64], %218 {strides = array<i32>} : memref<1x16x64xf32, #tpu.memory_space<vmem>>, vector<1x16x64xf32>,
    return
  }
  func.func @transform_0(%arg0: i32) -> (i32, i32, i32) {
    %c0_i32 = arith.constant 0 : i32
    %c0_i32_0 = arith.constant 0 : i32
    %c0_i32_1 = arith.constant 0 : i32
    return %arg0, %c0_i32, %c0_i32_0 : i32, i32, i32
  }
  func.func @transform_1(%arg0: i32) -> (i32, i32, i32) {
    %c0_i32 = arith.constant 0 : i32
    %c0_i32_0 = arith.constant 0 : i32
    %c0_i32_1 = arith.constant 0 : i32
    return %arg0, %c0_i32, %c0_i32_0 : i32, i32, i32
  }
  func.func @transform_2(%arg0: i32) -> (i32, i32) {
    %c0_i32 = arith.constant 0 : i32
    %c0_i32_0 = arith.constant 0 : i32
    %c0_i32_1 = arith.constant 0 : i32
    return %c0_i32, %c0_i32_0 : i32, i32
  }
  func.func @transform_3(%arg0: i32) -> (i32, i32) {
    %c0_i32 = arith.constant 0 : i32
    %c0_i32_0 = arith.constant 0 : i32
    %c0_i32_1 = arith.constant 0 : i32
    return %c0_i32, %c0_i32_0 : i32, i32
  }
  func.func @transform_4(%arg0: i32) -> (i32, i32) {
    %c0_i32 = arith.constant 0 : i32
    %c0_i32_0 = arith.constant 0 : i32
    %c0_i32_1 = arith.constant 0 : i32
    return %c0_i32, %c0_i32_0 : i32, i32
  }
  func.func @transform_5(%arg0: i32) -> (i32, i32) {
    %c0_i32 = arith.constant 0 : i32
    %c0_i32_0 = arith.constant 0 : i32
    %c0_i32_1 = arith.constant 0 : i32
    return %c0_i32, %c0_i32_0 : i32, i32
  }
  func.func @transform_6(%arg0: i32) -> (i32, i32, i32) {
    %c0_i32 = arith.constant 0 : i32
    %c0_i32_0 = arith.constant 0 : i32
    %c0_i32_1 = arith.constant 0 : i32
    return %arg0, %c0_i32, %c0_i32_0 : i32, i32, i32
  }
}

</mosaic_0001>

<bundles_post_ra>
// kernel: tpu_custom_call.1
= control target key start
LH: loop header
LB: loop body
LE: loop exit
PB: predicated region body
PF: predicated region fallthrough
CT: control target
= control target key end

     0   :  { %s2247_s0 = inlined_call_operand.hbm [shape: f32[2,16,64], index: 0, kind: input, shape index: {}]   ;;  %s2248_s1 = inlined_call_operand.hbm [shape: f32[2,8,64], index: 1, kind: input, shape index: {}]   ;;  %s2249_s2 = inlined_call_operand.hbm [shape: bf16[64,64], index: 2, kind: input, shape index: {}]   ;;  %s2250_s3 = inlined_call_operand.hbm [shape: bf16[64,128], index: 3, kind: input, shape index: {}]   ;;  %s2251_s4 = inlined_call_operand.hbm [shape: bf16[64,64], index: 4, kind: input, shape index: {}]   ;;  %s2252_s5 = inlined_call_operand.vmem [shape: f32[1,64], index: 5, kind: input, shape index: {}]   ;;  %s2253_s6 = inlined_call_operand.hbm [shape: f32[2,16,64], index: 6, kind: output, shape index: {}]  }
   0x1   :  { %2255 = sst [smem:[#allocation19_spill]] %s2247_s0 }
   0x2   :  { %2256 = sst [smem:[#allocation20_spill]] %s2249_s2 }
   0x3   :  { %2257 = sst [smem:[#allocation21_spill]] %s2250_s3 }
   0x4   :  { %2258 = sst [smem:[#allocation22_spill]] %s2251_s4 }
   0x5   :  { %11 = vsyncpa [#allocation3], 0 }
   0x6   :  { %13 = vsyncpa [#allocation3 + $0x1], 0 }
   0x7   :  { %14 = vsyncpa [#allocation6], 0 }
   0x8   :  { %16 = vsyncpa [#allocation6 + $0x1], 0 }
   0x9   :  { %17 = vsyncpa [#allocation9], 0 }
   0xa   :  { %18 = vsyncpa [#allocation4], 0 }
   0xb   :  { %20 = vsyncpa [#allocation4 + $0x1], 0  ;;  %s1918_s21 = smov 0   ;;  %s1920_s22 = smov 0  }
   0xc   :  { %s1922_s23 = smov 0   ;;  %s1924_s24 = smov 0  }
   0xd LB: > { %2259 = sst [smem:[#allocation17_spill]] %s1854_s23  ;;  %s1939_s25 = sadd.s32 4294967295, %s1858_s24   ;;  %s1858_s24 = sphi %s1924_s24, %s2276_s24   ;;  %s1854_s23 = sphi %s1922_s23, %s2273_s23   ;;  %s1850_s22 = sphi %s1920_s22, %s2275_s22   ;;  %s1846_s21 = sphi %s1918_s21, %s2274_s21  }
   0xe   : > { %s1372_s26 = sadd.s32 4294967294, %s1858_s24   ;;  %p46_p0 = scmp.ne.s32.totalorder %s1850_s22, %s1846_s21 }
   0xf   : > { %p47_p1 = scmp.eq.s32.totalorder %s1939_s25, 0  ;;  %p180_p2 = scmp.eq.s32.totalorder %s1939_s25, 1 }
  0x10   : > { %p186_p3 = scmp.eq.s32.totalorder %s1372_s26, 1  ;;  %p1373_p5 = scmp.ge.s32.totalorder %s1858_s24, 1 }
  0x11   : > { %p1948_p4 = por %p47_p1, %p46_p0  ;;  %p193_p7 = scmp.lt.s32.totalorder %s1858_s24, 3 }
  0x12   : > { %p1953_p6 = por %p186_p3, %p46_p0  ;;  %s2262_s2 = sld [smem:[#allocation20_spill]] }
  0x13   : > { %p1961_p8 = pnand %p1373_p5, %p193_p7  ;;  %s1860_s9 = smov [#allocation7]  }
  0x14   : > { %s206_s10 = sshll.u32 %s1860_s9, 4  ;;  %s2265_s3 = sld [smem:[#allocation21_spill]]  ;;  %s207_s10 = int_to_ptr.vmem [resolvable:$true] %s206_s10 }
  0x15   : > { %p1481_p9 = pneg %p1961_p8  ;;  %s1861_s15 = smov 64  }
  0x16   : > { %s1862_s16 = smov 4   ;;  %s1863_s17 = smov [#allocation8]  }
  0x17   : > { %p1969_p10 = pnand %p1481_p9, %p47_p1  ;;  %s220_s18 = sshll.u32 %s1863_s17, 4  ;;  %s221_s18 = int_to_ptr.vmem [resolvable:$true] %s220_s18 }
  0x18   : > { %s204_s7 = sshll.u32 %s2262_s2, 4  ;;  %s2266_s4 = sld [smem:[#allocation22_spill]]  ;;  %s205_s7 = int_to_ptr.hbm [resolvable:$true] %s204_s7 }
  0x19   : > { %1484 = dma.hbm_to_vmem [thread:$0]  (!%p1969_p10), %s205_s7, 512, %s207_s10, [#allocation6], %s1861_s15, %s1861_s15, %s1862_s16  }
  0x1a   : > { %s218_s14 = sshll.u32 %s2265_s3, 4  ;;  %s1864_s29 = smov [#allocation10]   ;;  %s219_s14 = int_to_ptr.hbm [resolvable:$true] %s218_s14 }
  0x1b   : > { %1487 = dma.hbm_to_vmem [thread:$0]  (!%p1969_p10), %s219_s14, 512, %s221_s18, [#allocation9], %s1861_s15, %s1861_s15, %s1862_s16  }
  0x1c   : > { %s234_s30 = sshll.u32 %s1864_s29, 4  ;;  %s1985_s7 = sadd.s32 1, %s1858_s24   ;;  %s235_s30 = int_to_ptr.vmem [resolvable:$true] %s234_s30 }
  0x1d   : > { %s30_s9 = ssub.s32 %s1858_s24, %s1985_s7  ;;  %s33_s10 = sadd.s32 1, %s1854_s23 }
  0x1e   : > { %s232_s26 = sshll.u32 %s2266_s4, 4  ;;  %p31_p12 = scmp.eq.s32.totalorder %s30_s9, 0  ;;  %s233_s26 = int_to_ptr.hbm [resolvable:$true] %s232_s26 }
  0x1f   : > { %1490 = dma.hbm_to_vmem [thread:$0]  (!%p1969_p10), %s233_s26, 512, %s235_s30, [#allocation9], %s1861_s15, %s1861_s15, %s1862_s16  }
  0x20   : > { %p40_p13 = scmp.ne.s32.totalorder %s1854_s23, %s1850_s22  ;;  %p41_p0 = scmp.eq.s32.totalorder %s1858_s24, 0 }
  0x21   : > { %p1505_p3 = scmp.lt.s32.totalorder %s1858_s24, 2  ;;  %s2006_s14 = sand.u32 1, %s1854_s23  }
  0x22   : > { %s1997_s12 = scalar_select %p31_p12, %s1854_s23, %s33_s10  }
  0x23   : > { %p42_p5 = por %p41_p0, %p40_p13  ;;  %p2001_p7 = por %p180_p2, %p40_p13 }
  0x24   : > { %2267 = sst [smem:[#allocation18_spill]] %s1997_s12  ;;  %s1453_s11 = sshll.u32 %s1858_s24, 4 }
  0x25   : > { %s1378_s15 = sshll.u32 %s2006_s14, 4  ;;  %s2269_s0 = sld [smem:[#allocation19_spill]] }
  0x26   : > { %s255_s20 = scalar_lea.vmem [#allocation2], %s1378_s15  ;;  %p2015_p2 = pnand %p1505_p3, %p42_p5 }
  0x27   : > { %s263_s26 = sshll.u32 %s255_s20, 4  ;;  %s273_s30 = sand.u32 1, %s1858_s24   ;;  %s264_s26 = int_to_ptr.vmem [resolvable:$true] %s263_s26 }
  0x28   : > { %s252_s9 = scalar_lea.sflag [#allocation3], %s2006_s14  ;;  %p1724_p10 = pneg %p2015_p2 }
  0x2b   : > { %s260_s18 = scalar_lea.hbm %s2269_s0, %s1453_s11  ;;  %s1727_s16 = scalar_lea.hbm %s2269_s0, 32 }
  0x2c   : > { %s261_s19 = sshll.u32 %s260_s18, 4  ;;  %s262_s19 = int_to_ptr.hbm [resolvable:$true] %s261_s19 }
  0x2d   : > { %s1720_s10 = sshra.s32 %s262_s19, 4  ;;  %s1721_s10 = int_to_ptr.hbm [resolvable:$true] %s1720_s10 }
  0x2e   : > { %s1722_s2 = scalar_lea.hbm %s1721_s10, 16  ;;  %p1728_p0 = scmp.lt.s32.totalorder %s1721_s10, %s2269_s0 }
  0x2f   : > { %p1723_p9 = scmp.ne.s32.totalorder %s1721_s10, %s1722_s2  ;;  %p1729_p3 = scmp.lt.s32.totalorder %s1727_s16, %s1722_s2 }
  0x31   : > { %p1725_p12 = pnand %p1724_p10, %p1723_p9  ;;  %p1730_p5 = por %p1729_p3, %p1728_p0 }
  0x33   : > { %p1726_p13 = pneg %p1725_p12 }
  0x35   : > { %p1731_p11 = pnand %p1730_p5, %p1726_p13 }
  0x37   : > { %1734 = shalt.err (!%p1731_p11)
}
  0x38   : > { %s1865_s20 = smov 128   ;;  %s1866_s3 = smov 8  }
  0x39   : > { %1494 = dma.hbm_to_vmem [thread:$0]  (!%p2015_p2), %s262_s19, 256, %s264_s26, %s252_s9, %s1865_s20, %s1865_s20, %s1866_s3  }
  0x3a   : > { %s1381_s4 = sshll.u32 %s2006_s14, 3  ;;  %s1382_s12 = sshll.u32 %s1858_s24, 3 }
  0x3b   : > { %s281_s23 = scalar_lea.hbm %s2248_s1, %s1382_s12  ;;  %s277_s10 = scalar_lea.vmem [#allocation5], %s1381_s4 }
  0x3c   : > { %s283_s17 = sshll.u32 %s281_s23, 4  ;;  %s285_s2 = sshll.u32 %s277_s10, 4  ;;  %s284_s17 = int_to_ptr.hbm [resolvable:$true] %s283_s17  ;;  %s286_s2 = int_to_ptr.vmem [resolvable:$true] %s285_s2 }
  0x3d   : > { %s274_s16 = scalar_lea.sflag [#allocation6], %s273_s30  ;;  %s1750_s18 = sshra.s32 %s284_s17, 4  ;;  %s1751_s18 = int_to_ptr.hbm [resolvable:$true] %s1750_s18 }
  0x3e   : > { %s1752_s0 = scalar_lea.hbm %s1751_s18, 8  ;;  %s1757_s19 = scalar_lea.hbm %s2248_s1, 16 }
  0x3f   : > { %p1753_p11 = scmp.ne.s32.totalorder %s1751_s18, %s1752_s0  ;;  %p1758_p13 = scmp.lt.s32.totalorder %s1751_s18, %s2248_s1 }
  0x40   : > { %p1759_p0 = scmp.lt.s32.totalorder %s1757_s19, %s1752_s0 }
  0x41   : > { %p1755_p9 = pnand %p1753_p11, %p1724_p10 }
  0x42   : > { %p1760_p3 = por %p1759_p0, %p1758_p13 }
  0x43   : > { %p1756_p12 = pneg %p1755_p9 }
  0x45   : > { %p1761_p5 = pnand %p1760_p3, %p1756_p12 }
  0x47   : > { %1764 = shalt.err (!%p1761_p5)
}
  0x48   : > { %1497 = dma.hbm_to_vmem [thread:$0]  (!%p2015_p2), %s284_s17, 128, %s286_s2, %s274_s16  }
  0x49   : > { %294 = sbr.rel (%p1961_p8) target bundleno = 2733 (0xaad), region = 44  ;;  %s2053_s4 = sand.u32 (!%p1961_p8), 1, %s1850_s22  }
  0x4a   : > { %s1384_s23 = sshll.u32 (!%p1961_p8), %s2053_s4, 4  ;;  %s297_s30 = scalar_lea.sflag (!%p1961_p8), [#allocation3], %s2053_s4 }
  0x4b   : > { %s300_s0 = scalar_lea.vmem (!%p1961_p8), [#allocation2], %s1384_s23 }
  0x4e   : > { %1825 = dma.done.wait (%p1948_p4), %s297_s30, 256  }
  0x4f   : > { %1827 = vsyncadd (%p1948_p4), %s297_s30, 4294967040  ;;  %s306_s8 = sand.u32 1, %s1939_s25   ;;  %s1385_s29 = sshll.u32 %s2053_s4, 3 }
  0x50   : > { %s307_s9 = scalar_lea.sflag [#allocation6], %s306_s8  ;;  %s310_s20 = scalar_lea.vmem [#allocation5], %s1385_s29 }
  0x51   : > { %1829 = dma.done.wait (%p1948_p4), %s307_s9, 128  }
  0x52   : > { %1831 = vsyncadd (%p1948_p4), %s307_s9, 4294967168 }
  0x53   : > { %1833 = dma.done.wait (%p47_p1), [#allocation6], 512  }
  0x54   : > { %1835 = vsyncadd (%p47_p1), [#allocation6], 4294966784 }
  0x55   : > { %1837 = dma.done.wait (%p47_p1), [#allocation9], 1024  }
  0x56   : > { %1839 = vsyncadd (%p47_p1), [#allocation9], 4294966272  ;;  %v1457_v0 = vld [vmem:[#allocation7 + $0x18] sm:$0xff]  ;;  %v1456_v2 = vld [vmem:[#allocation7 + $0x10] sm:$0xff]  ;;  %vm414_vm0 = vcmask 523264   ;;  %vm478_vm1 = vcmask 64512  }
  0x57   : > { %v1461_v1 = vld [vmem:[#allocation8 + $0x18] sm:$0xff]  ;;  %422 = vmatpush.bf16.msra.mxu0 %v1457_v0  ;;  %v1460_v3 = vld [vmem:[#allocation8 + $0x10] sm:$0xff]  ;;  %v1455_v4 = vld [vmem:[#allocation7 + $0x8] sm:$0xff]  ;;  %s1867_s27 = smov 120   ;;  %s1868_s11 = smov 64   ;;  %vm530_vm2 = vcmask 1043456  }
  0x58   : > { %463 = vmatpush.bf16.msra.mxu1 %v1461_v1  ;;  %v1459_v5 = vld [vmem:[#allocation8 + $0x8] sm:$0xff]  ;;  %v1454_v6 = vld [vmem:[#allocation7] sm:$0xff]  ;;  %v364_v10 = vld [vmem:[%s310_s20] sm:$0xff]  ;;  %s1869_s15 = smov 104   ;;  %s1870_s17 = smov 112  }
  0x59   : > { %v1458_v7 = vld [vmem:[#allocation8] sm:$0xff]  ;;  %v362_v9 = vld [vmem:[%s300_s0 + $0x8] sm:$0xff]  ;;  %v365_v12 = vpack.c.bf16 %v364_v10, %v364_v10  ;;  %s1871_s10 = smov 56   ;;  %s1872_s18 = smov 48  }
  0x5a   : > { %v361_v8 = vld [vmem:[%s300_s0] sm:$0xff]  ;;  %s1873_s3 = smov 88   ;;  %s1874_s14 = smov 40  }
  0x5b   : > { %423 = vmatpush.bf16.msra.mxu0 %v1456_v2  ;;  %v363_v11 = vpack.c.bf16 %v362_v9, %v361_v8  ;;  %v383_v45 = vld [vmem:[#allocation10 + $0x4] sm:$0xf]  ;;  %v382_v55 = vld [vmem:[#allocation10] sm:$0xf]  ;;  %s1875_s19 = smov 96   ;;  %s1876_s26 = smov 24  }
  0x5c   : > { %464 = vmatpush.bf16.msra.mxu1 %v1460_v3  ;;  %v648_v47 = vsel %vm530_vm2, %v383_v45, 0  ;;  %v553_v57 = vsel %vm530_vm2, %v382_v55, 0  ;;  %s1877_s12 = smov 80   ;;  %s1878_s30 = smov 72  }
  0x5d   : > { %s1879_s0 = smov 32   ;;  %s1880_s8 = smov 8  }
  0x5e   : > { %s1881_s29 = smov 16   ;;  %s1462_s9 = sshll.u32 %s1939_s25, 4 }
  0x5f   : > { %424 = vmatpush.bf16.msra.mxu0 %v1455_v4  ;;  %s359_s20 = scalar_lea.vmem [#allocation11], %s1384_s23  ;;  %s1233_s25 = scalar_lea.sflag [#allocation4], %s2053_s4 }
  0x60   : > { %465 = vmatpush.bf16.msra.mxu1 %v1459_v5 }
  0x63   : > { %425 = vmatpush.bf16.msra.mxu0 %v1454_v6 }
  0x64   : > { %466 = vmatpush.bf16.msra.mxu1 %v1458_v7 }
  0x66   : > { %1406 = vmatmul.msk.bf16.vlgmr.msra.gmra.mxu0 %vm414_vm0, %v363_v11 }
  0x67   : > { %1423 = vmatmul.msk.bf16.vlgmr.msra.gmra.mxu1 %vm414_vm0, %v365_v12 }
  0x68   : > { %657 = vmatpush.bf16.msrb.mxu1 %v648_v47 }
  0xe3   : > { %v427_v13 = vpop.f32.mrf.mxu0 }
  0xe4   : > { %v468_v14 = vpop.f32.mrf.mxu1 }
  0xe5   : > { %v2079_v15 = vpack.c.bf16 %v468_v14, %v468_v14 }
  0xe7   : > { %574 = vrot.lane.b32.xlu0 %v2079_v15, %s1867_s27  ;;  %v483_v16 = vsel %vm478_vm1, %v2079_v15, 0 }
  0xe8   : > { %492 = vmatpush.bf16.xpose.msra.mxu2 %v483_v16 }
  0xeb   : > { %v429_v17 = vpop.f32.mrf.mxu0 }
  0xec   : > { %v470_v18 = vpop.f32.mrf.mxu1  ;;  %v2084_v19 = vpack.c.bf16 %v429_v17, %v427_v13 }
  0xef   : > { %572 = vrot.lane.b32.xlu0 %v2084_v19, %s1867_s27  ;;  %1424 = vmatmul.msk.bf16.vlgmr.msra.gmra.mxu2 %vm478_vm1, %v2084_v19 }
 0x159   : > { %v575_v20 = vpop.permute.xlu0 %574 }
 0x15a   : > { %v580_v21 = vsel %vm478_vm1, %v575_v20, 0 }
 0x15b   : > { %589 = vmatpush.bf16.xpose.msrb.mxu2 %v580_v21 }
 0x161   : > { %v573_v22 = vpop.permute.xlu0 %572 }
 0x162   : > { %1427 = vmatmul.msk.bf16.vlgmr.msrb.gmra.mxu2 %vm478_vm1, %v573_v22 }
 0x172   : > { %v494_v23 = vpop.f32.mrf.mxu2 }
 0x173   : > { %v499_v24 = vmul.f32 0.35355338, %v494_v23 }
 0x175   : > { %v501_v25 = vsel %vm478_vm1, %v499_v24, -inf }
 0x176   : > { %502 = vmax.xlane.f32.xlu1 %v501_v25 }
 0x17a   : > { %v496_v26 = vpop.f32.mrf.mxu2 }
 0x17b   : > { %v500_v27 = vmul.f32 0.35355338, %v496_v26 }
 0x17d   : > { %v504_v28 = vsel %vm478_vm1, %v500_v27, -inf }
 0x17e   : > { %505 = vmax.xlane.f32.xlu1 %v504_v28 }
 0x1e5   : > { %v591_v29 = vpop.f32.mrf.mxu2 }
 0x1e6   : > { %v596_v30 = vmul.f32 0.35355338, %v591_v29 }
 0x1e8   : > { %v598_v31 = vsel %vm478_vm1, %v596_v30, -inf }
 0x1e9   : > { %v503_v32 = vpop.xlane.xlu1 %502  ;;  %599 = vmax.xlane.f32.xlu2 %v598_v31 }
 0x1ea   : > { %v507_v33 = vsub.f32 %v499_v24, %v503_v32  ;;  %v1565_v32 = vld [vmem:[%s2252_s5] ss:$0 sm:$0xff] }
 0x1ec   : > { %v509_v34 = vmul.f32 1.442695, %v507_v33 }
 0x1ed   : > { %v593_v35 = vpop.f32.mrf.mxu2 }
 0x1ee   : > { %1566 = vpow2.f32 %v509_v34  ;;  %v597_v36 = vmul.f32 0.35355338, %v593_v35 }
 0x1f0   : > { %v601_v37 = vsel %vm478_vm1, %v597_v36, -inf }
 0x1f1   : > { %602 = vmax.xlane.f32.xlu2 %v601_v37  ;;  %v506_v38 = vpop.xlane.xlu1 %505 }
 0x1f2   : > { %v508_v39 = vsub.f32 %v500_v27, %v506_v38 }
 0x1f4   : > { %v1567_v40 = vpop.eup %1566  ;;  %v511_v41 = vmul.f32 1.442695, %v508_v39 }
 0x1f5   : > { %v513_v42 = vsel %vm478_vm1, %v1567_v40, 0.0 }
 0x1f6   : > { %1568 = vpow2.f32 %v511_v41  ;;  %514 = vadd.xlane.f32.xlu0 %v513_v42 }
 0x1fc   : > { %v1569_v43 = vpop.eup %1568 }
 0x1fd   : > { %v516_v44 = vsel %vm478_vm1, %v1569_v43, 0.0 }
 0x1fe   : > { %517 = vadd.xlane.f32.xlu1 %v516_v44 }
 0x209   : > { %525 = vrot.lane.b32.xlu2 %v2079_v15, %s1868_s11 }
 0x20a   : > { %760 = vrot.lane.b32.xlu0 %v2084_v19, %s1869_s15 }
 0x211   : > { %668 = vrot.lane.b32.xlu2 %v2079_v15, %s1870_s17 }
 0x219   : > { %762 = vrot.lane.b32.xlu2 %v2079_v15, %s1869_s15  ;;  %s1244_s15 = scalar_lea.hbm %s2253_s6, %s1462_s9 }
 0x221   : > { %666 = vrot.lane.b32.xlu2 %v2084_v19, %s1870_s17  ;;  %s1245_s17 = sshll.u32 %s359_s20, 4  ;;  %s1246_s17 = int_to_ptr.vmem [resolvable:$true] %s1245_s17 }
 0x25c   : > { %v600_v46 = vpop.xlane.xlu2 %599 }
 0x25d   : > { %v604_v48 = vsub.f32 %v596_v30, %v600_v46 }
 0x25f   : > { %v606_v49 = vmul.f32 1.442695, %v604_v48 }
 0x261   : > { %1570 = vpow2.f32 %v606_v49 }
 0x264   : > { %v603_v50 = vpop.xlane.xlu2 %602 }
 0x265   : > { %v605_v51 = vsub.f32 %v597_v36, %v603_v50 }
 0x267   : > { %v1571_v52 = vpop.eup %1570  ;;  %v608_v53 = vmul.f32 1.442695, %v605_v51 }
 0x268   : > { %v610_v54 = vsel %vm478_vm1, %v1571_v52, 0.0 }
 0x269   : > { %1572 = vpow2.f32 %v608_v53  ;;  %611 = vadd.xlane.f32.xlu1 %v610_v54  ;;  %v515_v58 = vpop.xlane.xlu0 %514 }
 0x26a   : > { %1574 = vrcp.f32 %v515_v58 }
 0x26c   : > { %v526_v56 = vpop.permute.xlu2 %525 }
 0x26d   : > { %v532_v59 = vsel %vm530_vm2, %v526_v56, 0 }
 0x26e   : > { %541 = vmatpush.bf16.msra.mxu3 %v532_v59 }
 0x26f   : > { %v1573_v60 = vpop.eup %1572 }
 0x270   : > { %v613_v61 = vsel %vm478_vm1, %v1573_v60, 0.0  ;;  %v1575_v0 = vpop.eup %1574 }
 0x271   : > { %614 = vadd.xlane.f32.xlu1 %v613_v61  ;;  %v518_v62 = vpop.xlane.xlu1 %517  ;;  %v521_v2 = vmul.f32 %v1575_v0, %v1567_v40 }
 0x272   : > { %562 = vmatpush.bf16.msrb.mxu3 %v553_v57  ;;  %1576 = vrcp.f32 %v518_v62 }
 0x274   : > { %v669_v63 = vpop.permute.xlu2 %668 }
 0x275   : > { %v674_v6 = vsel %vm478_vm1, %v669_v63, 0 }
 0x278   : > { %v1577_v1 = vpop.eup %1576 }
 0x279   : > { %v522_v3 = vmul.f32 %v1577_v1, %v1569_v43 }
 0x27b   : > { %v523_v4 = vpack.c.bf16 %v522_v3, %v521_v2 }
 0x27c   : > { %v763_v5 = vpop.permute.xlu2 %762  ;;  %v761_v28 = vpop.permute.xlu0 %760 }
 0x27d   : > { %v768_v7 = vsel %vm478_vm1, %v763_v5, 0  ;;  %1425 = vmatmul.msk.bf16.vlgmr.msra.gmra.mxu3 %vm478_vm1, %v523_v4  ;;  %v384_v4 = vld [vmem:[#allocation10 + $0x8] sm:$0xf] }
 0x27e   : > { %683 = vmatpush.bf16.xpose.msra.mxu3 %v674_v6  ;;  %777 = vmatpush.bf16.xpose.msra.mxu1 %v768_v7  ;;  %v742_v5 = vsel %vm530_vm2, %v384_v4, 0 }
 0x284   : > { %v667_v22 = vpop.permute.xlu2 %666 }
 0x28a   : > { %621 = vrot.lane.b32.xlu1 %v2079_v15, %s1871_s10  ;;  %s1247_s10 = sshll.u32 %s1244_s15, 4  ;;  %s1248_s10 = int_to_ptr.hbm [resolvable:$true] %s1247_s10 }
 0x28b   : > { %s1794_s23 = sshra.s32 %s1248_s10, 4  ;;  %s1795_s23 = int_to_ptr.hbm [resolvable:$true] %s1794_s23 }
 0x28c   : > { %s1796_s2 = scalar_lea.hbm %s1795_s23, 16  ;;  %p1801_p2 = scmp.lt.s32.totalorder %s1795_s23, %s2253_s6 }
 0x28d   : > { %p1797_p1 = scmp.ne.s32.totalorder %s1795_s23, %s1796_s2 }
 0x28f   : > { %p1798_p4 = pnand %p1797_p1, %p2001_p7 }
 0x291   : > { %p1799_p8 = pneg %p1798_p4 }
 0x2dc   : > { %v612_v8 = vpop.xlane.xlu1 %611 }
 0x2e4   : > { %v615_v9 = vpop.xlane.xlu1 %614 }
 0x2e5   : > { %1578 = vrcp.f32 %v615_v9 }
 0x2e6   : > { %1580 = vrcp.f32 %v612_v8 }
 0x2eb   : > { %v1579_v10 = vpop.eup %1578 }
 0x2ec   : > { %v1581_v11 = vpop.eup %1580  ;;  %v619_v12 = vmul.f32 %v1579_v10, %v1573_v60 }
 0x2ed   : > { %v618_v14 = vmul.f32 %v1581_v11, %v1571_v52 }
 0x2ef   : > { %v620_v17 = vpack.c.bf16 %v619_v12, %v618_v14 }
 0x2fc   : > { %v622_v13 = vpop.permute.xlu1 %621 }
 0x2fd   : > { %v627_v16 = vsel %vm530_vm2, %v622_v13, 0 }
 0x2fe   : > { %636 = vmatpush.bf16.msrb.mxu0 %v627_v16 }
 0x300   : > { %v543_v18 = vpop.f32.mrf.mxu3 }
 0x301   : > { %1428 = vmatmul.msk.bf16.vlgmr.msrb.gmra.mxu0 %vm478_vm1, %v620_v17 }
 0x302   : > { %751 = vmatpush.bf16.msra.mxu0 %v742_v5 }
 0x308   : > { %v545_v20 = vpop.f32.mrf.mxu3 }
 0x309   : > { %v548_v21 = vpack.c.bf16 %v545_v20, %v543_v18  ;;  %v385_v20 = vld [vmem:[#allocation10 + $0xc] sm:$0xf] }
 0x30b   : > { %1426 = vmatmul.msk.bf16.vlgmr.msrb.gmra.mxu3 %vm478_vm1, %v548_v21 }
 0x31b   : > { %1430 = vmatmul.msk.bf16.vlgmr.msra.gmra.mxu3 %vm478_vm1, %v667_v22 }
 0x37e   : > { %v638_v23 = vpop.f32.mrf.mxu0 }
 0x386   : > { %v640_v24 = vpop.f32.mrf.mxu0 }
 0x387   : > { %v643_v25 = vpack.c.bf16 %v640_v24, %v638_v23  ;;  %v836_v24 = vsel %vm530_vm2, %v385_v20, 0 }
 0x389   : > { %1429 = vmatmul.msk.bf16.vlgmr.msrb.gmra.mxu1 %vm478_vm1, %v643_v25 }
 0x38e   : > { %v564_v26 = vpop.f32.mrf.mxu3 }
 0x38f   : > { %v569_v33 = vadd.f32 %v1565_v32, %v564_v26 }
 0x396   : > { %v566_v27 = vpop.f32.mrf.mxu3 }
 0x397   : > { %v570_v36 = vadd.f32 %v1565_v32, %v566_v27 }
 0x399   : > { %1433 = vmatmul.msk.bf16.vlgmr.msra.gmra.mxu1 %vm478_vm1, %v761_v28 }
 0x39e   : > { %v685_v29 = vpop.f32.mrf.mxu3 }
 0x39f   : > { %v690_v30 = vmul.f32 0.35355338, %v685_v29 }
 0x3a1   : > { %v692_v31 = vsel %vm478_vm1, %v690_v30, -inf }
 0x3a2   : > { %693 = vmax.xlane.f32.xlu0 %v692_v31 }
 0x3a6   : > { %v687_v44 = vpop.f32.mrf.mxu3 }
 0x3a7   : > { %v691_v46 = vmul.f32 0.35355338, %v687_v44 }
 0x3a9   : > { %v695_v49 = vsel %vm478_vm1, %v691_v46, -inf }
 0x406   : > { %v659_v34 = vpop.f32.mrf.mxu1 }
 0x407   : > { %v2121_v35 = vadd.f32 %v659_v34, %v569_v33 }
 0x40e   : > { %v661_v37 = vpop.f32.mrf.mxu1 }
 0x40f   : > { %v2123_v38 = vadd.f32 %v661_v37, %v570_v36 }
 0x415   : > { %v694_v39 = vpop.xlane.xlu0 %693 }
 0x416   : > { %v779_v40 = vpop.f32.mrf.mxu1  ;;  %v698_v42 = vsub.f32 %v690_v30, %v694_v39 }
 0x417   : > { %v784_v41 = vmul.f32 0.35355338, %v779_v40 }
 0x418   : > { %v700_v45 = vmul.f32 1.442695, %v698_v42 }
 0x419   : > { %v786_v43 = vsel %vm478_vm1, %v784_v41, -inf }
 0x41a   : > { %787 = vmax.xlane.f32.xlu2 %v786_v43  ;;  %1582 = vpow2.f32 %v700_v45 }
 0x41e   : > { %v781_v47 = vpop.f32.mrf.mxu1 }
 0x41f   : > { %v785_v48 = vmul.f32 0.35355338, %v781_v47 }
 0x420   : > { %v1583_v51 = vpop.eup %1582 }
 0x421   : > { %v789_v50 = vsel %vm478_vm1, %v785_v48, -inf  ;;  %v704_v52 = vsel %vm478_vm1, %v1583_v51, 0.0 }
 0x422   : > { %696 = vmax.xlane.f32.xlu2 %v695_v49  ;;  %790 = vmax.xlane.f32.xlu1 %v789_v50 }
 0x42a   : > { %705 = vadd.xlane.f32.xlu1 %v704_v52 }
 0x48d   : > { %v788_v53 = vpop.xlane.xlu2 %787 }
 0x48e   : > { %v792_v54 = vsub.f32 %v784_v41, %v788_v53 }
 0x490   : > { %v794_v55 = vmul.f32 1.442695, %v792_v54 }
 0x492   : > { %1584 = vpow2.f32 %v794_v55 }
 0x495   : > { %v697_v56 = vpop.xlane.xlu2 %696  ;;  %v791_v57 = vpop.xlane.xlu1 %790 }
 0x496   : > { %v699_v58 = vsub.f32 %v691_v46, %v697_v56  ;;  %v793_v59 = vsub.f32 %v785_v48, %v791_v57 }
 0x498   : > { %v1585_v60 = vpop.eup %1584  ;;  %v702_v61 = vmul.f32 1.442695, %v699_v58  ;;  %v796_v62 = vmul.f32 1.442695, %v793_v59 }
 0x499   : > { %v798_v63 = vsel %vm478_vm1, %v1585_v60, 0.0 }
 0x49a   : > { %1586 = vpow2.f32 %v702_v61  ;;  %799 = vadd.xlane.f32.xlu1 %v798_v63 }
 0x49b   : > { %1588 = vpow2.f32 %v796_v62 }
 0x49d   : > { %v706_v6 = vpop.xlane.xlu1 %705 }
 0x4a0   : > { %v1587_v0 = vpop.eup %1586 }
 0x4a1   : > { %v1589_v1 = vpop.eup %1588  ;;  %v707_v2 = vsel %vm478_vm1, %v1587_v0, 0.0 }
 0x4a2   : > { %708 = vadd.xlane.f32.xlu0 %v707_v2  ;;  %v801_v3 = vsel %vm478_vm1, %v1589_v1, 0.0 }
 0x4a3   : > { %802 = vadd.xlane.f32.xlu2 %v801_v3 }
 0x4b3   : > { %715 = vrot.lane.b32.xlu1 %v2079_v15, %s1872_s18 }
 0x4b6   : > { %950 = vrot.lane.b32.xlu0 %v2079_v15, %s1873_s3 }
 0x4bb   : > { %809 = vrot.lane.b32.xlu2 %v2079_v15, %s1874_s14  ;;  %854 = vrot.lane.b32.xlu1 %v2084_v19, %s1875_s19 }
 0x4be   : > { %948 = vrot.lane.b32.xlu0 %v2084_v19, %s1873_s3  ;;  %s1800_s3 = scalar_lea.hbm %s2253_s6, 32 }
 0x4bf   : > { %p1802_p10 = scmp.lt.s32.totalorder %s1800_s3, %s1796_s2 }
 0x4c1   : > { %p1803_p11 = por %p1802_p10, %p1801_p2 }
 0x4c3   : > { %856 = vrot.lane.b32.xlu2 %v2079_v15, %s1875_s19  ;;  %p1804_p9 = pnand %p1803_p11, %p1799_p8 }
 0x50d   : > { %v800_v7 = vpop.xlane.xlu1 %799 }
 0x50e   : > { %1590 = vrcp.f32 %v800_v7 }
 0x514   : > { %v1591_v10 = vpop.eup %1590 }
 0x515   : > { %v709_v9 = vpop.xlane.xlu0 %708  ;;  %v806_v12 = vmul.f32 %v1591_v10, %v1585_v60 }
 0x516   : > { %v803_v8 = vpop.xlane.xlu2 %802 }
 0x517   : > { %1592 = vrcp.f32 %v803_v8 }
 0x518   : > { %1594 = vrcp.f32 %v709_v9 }
 0x519   : > { %1596 = vrcp.f32 %v706_v6 }
 0x51d   : > { %v1593_v11 = vpop.eup %1592 }
 0x51e   : > { %v807_v13 = vmul.f32 %v1593_v11, %v1589_v1  ;;  %v810_v14 = vpop.permute.xlu2 %809  ;;  %v1595_v18 = vpop.eup %1594 }
 0x51f   : > { %v815_v16 = vsel %vm530_vm2, %v810_v14, 0  ;;  %v1597_v21 = vpop.eup %1596  ;;  %v713_v22 = vmul.f32 %v1595_v18, %v1587_v0 }
 0x520   : > { %v808_v17 = vpack.c.bf16 %v807_v13, %v806_v12  ;;  %824 = vmatpush.bf16.msrb.mxu3 %v815_v16  ;;  %v712_v25 = vmul.f32 %v1597_v21, %v1583_v51 }
 0x522   : > { %v714_v29 = vpack.c.bf16 %v713_v22, %v712_v25 }
 0x523   : > { %1434 = vmatmul.msk.bf16.vlgmr.msrb.gmra.mxu3 %vm478_vm1, %v808_v17  ;;  %v386_v17 = vld [vmem:[#allocation10 + $0x10] sm:$0xf] }
 0x524   : > { %v930_v18 = vsel %vm530_vm2, %v386_v17, 0 }
 0x525   : > { %v716_v23 = vpop.permute.xlu1 %715  ;;  %939 = vmatpush.bf16.msra.mxu3 %v930_v18 }
 0x526   : > { %v857_v26 = vpop.permute.xlu2 %856  ;;  %v721_v27 = vsel %vm530_vm2, %v716_v23, 0 }
 0x527   : > { %v862_v28 = vsel %vm478_vm1, %v857_v26, 0  ;;  %730 = vmatpush.bf16.msra.mxu2 %v721_v27 }
 0x528   : > { %871 = vmatpush.bf16.xpose.msrb.mxu0 %v862_v28  ;;  %v951_v30 = vpop.permute.xlu0 %950 }
 0x529   : > { %v956_v31 = vsel %vm478_vm1, %v951_v30, 0 }
 0x52a   : > { %1431 = vmatmul.msk.bf16.vlgmr.msra.gmra.mxu2 %vm478_vm1, %v714_v29 }
 0x52b   : > { %845 = vmatpush.bf16.msrb.mxu2 %v836_v24 }
 0x52d   : > { %v855_v41 = vpop.permute.xlu1 %854 }
 0x52f   : > { %965 = vmatpush.bf16.xpose.msra.mxu2 %v956_v31 }
 0x530   : > { %v949_v40 = vpop.permute.xlu0 %948 }
 0x5a6   : > { %v826_v32 = vpop.f32.mrf.mxu3 }
 0x5ad   : > { %v732_v33 = vpop.f32.mrf.mxu2 }
 0x5ae   : > { %v828_v34 = vpop.f32.mrf.mxu3 }
 0x5af   : > { %v831_v36 = vpack.c.bf16 %v828_v34, %v826_v32 }
 0x5b1   : > { %1435 = vmatmul.msk.bf16.vlgmr.msrb.gmra.mxu2 %vm478_vm1, %v831_v36 }
 0x5b5   : > { %v734_v37 = vpop.f32.mrf.mxu2 }
 0x5b6   : > { %v737_v39 = vpack.c.bf16 %v734_v37, %v732_v33  ;;  %v387_v33 = vld [vmem:[#allocation10 + $0x14] sm:$0xf] }
 0x5b8   : > { %1432 = vmatmul.msk.bf16.vlgmr.msra.gmra.mxu0 %vm478_vm1, %v737_v39  ;;  %v1024_v39 = vsel %vm530_vm2, %v387_v33, 0 }
 0x5c1   : > { %1439 = vmatmul.msk.bf16.vlgmr.msra.gmra.mxu2 %vm478_vm1, %v949_v40 }
 0x5c8   : > { %1436 = vmatmul.msk.bf16.vlgmr.msrb.gmra.mxu0 %vm478_vm1, %v855_v41 }
 0x634   : > { %v847_v42 = vpop.f32.mrf.mxu2 }
 0x635   : > { %v753_v43 = vpop.f32.mrf.mxu0 }
 0x636   : > { %v758_v44 = vadd.f32 %v753_v43, %v2121_v35 }
 0x638   : > { %v2151_v45 = vadd.f32 %v847_v42, %v758_v44 }
 0x63c   : > { %v849_v46 = vpop.f32.mrf.mxu2 }
 0x63d   : > { %v755_v47 = vpop.f32.mrf.mxu0 }
 0x63e   : > { %v759_v48 = vadd.f32 %v755_v47, %v2123_v38 }
 0x640   : > { %v2154_v49 = vadd.f32 %v849_v46, %v759_v48 }
 0x644   : > { %v967_v50 = vpop.f32.mrf.mxu2 }
 0x645   : > { %v972_v51 = vmul.f32 0.35355338, %v967_v50  ;;  %v873_v52 = vpop.f32.mrf.mxu0 }
 0x646   : > { %v878_v53 = vmul.f32 0.35355338, %v873_v52 }
 0x647   : > { %v974_v54 = vsel %vm478_vm1, %v972_v51, -inf }
 0x648   : > { %975 = vmax.xlane.f32.xlu1 %v974_v54  ;;  %v880_v55 = vsel %vm478_vm1, %v878_v53, -inf }
 0x649   : > { %881 = vmax.xlane.f32.xlu2 %v880_v55 }
 0x64c   : > { %v969_v56 = vpop.f32.mrf.mxu2 }
 0x64d   : > { %v973_v35 = vmul.f32 0.35355338, %v969_v56  ;;  %v875_v57 = vpop.f32.mrf.mxu0 }
 0x64e   : > { %v879_v58 = vmul.f32 0.35355338, %v875_v57 }
 0x64f   : > { %v977_v59 = vsel %vm478_vm1, %v973_v35, -inf }
 0x650   : > { %v883_v38 = vsel %vm478_vm1, %v879_v58, -inf }
 0x651   : > { %978 = vmax.xlane.f32.xlu2 %v977_v59  ;;  %884 = vmax.xlane.f32.xlu0 %v883_v38 }
 0x6bb   : > { %v976_v60 = vpop.xlane.xlu1 %975 }
 0x6bc   : > { %v980_v61 = vsub.f32 %v972_v51, %v976_v60  ;;  %v882_v62 = vpop.xlane.xlu2 %881 }
 0x6bd   : > { %v886_v63 = vsub.f32 %v878_v53, %v882_v62 }
 0x6be   : > { %v982_v0 = vmul.f32 1.442695, %v980_v61 }
 0x6bf   : > { %v888_v1 = vmul.f32 1.442695, %v886_v63 }
 0x6c0   : > { %1598 = vpow2.f32 %v982_v0 }
 0x6c1   : > { %1600 = vpow2.f32 %v888_v1 }
 0x6c4   : > { %v979_v2 = vpop.xlane.xlu2 %978  ;;  %v885_v3 = vpop.xlane.xlu0 %884 }
 0x6c5   : > { %v981_v4 = vsub.f32 %v973_v35, %v979_v2  ;;  %v887_v5 = vsub.f32 %v879_v58, %v885_v3 }
 0x6c6   : > { %v1599_v6 = vpop.eup %1598 }
 0x6c7   : > { %v1601_v7 = vpop.eup %1600  ;;  %v984_v8 = vmul.f32 1.442695, %v981_v4  ;;  %v890_v9 = vmul.f32 1.442695, %v887_v5  ;;  %v986_v10 = vsel %vm478_vm1, %v1599_v6, 0.0 }
 0x6c8   : > { %987 = vadd.xlane.f32.xlu2 %v986_v10  ;;  %v892_v11 = vsel %vm478_vm1, %v1601_v7, 0.0 }
 0x6c9   : > { %1602 = vpow2.f32 %v984_v8  ;;  %893 = vadd.xlane.f32.xlu0 %v892_v11 }
 0x6ca   : > { %1604 = vpow2.f32 %v890_v9 }
 0x6cf   : > { %v1603_v12 = vpop.eup %1602 }
 0x6d0   : > { %v1605_v13 = vpop.eup %1604  ;;  %v989_v14 = vsel %vm478_vm1, %v1603_v12, 0.0 }
 0x6d1   : > { %990 = vadd.xlane.f32.xlu0 %v989_v14  ;;  %v895_v16 = vsel %vm478_vm1, %v1605_v13, 0.0 }
 0x6d2   : > { %896 = vadd.xlane.f32.xlu1 %v895_v16 }
 0x6e0   : > { %997 = vrot.lane.b32.xlu2 %v2079_v15, %s1876_s26 }
 0x6e5   : > { %1044 = vrot.lane.b32.xlu0 %v2079_v15, %s1877_s12 }
 0x6e8   : > { %1136 = vrot.lane.b32.xlu2 %v2084_v19, %s1878_s30 }
 0x6eb   : > { %903 = vrot.lane.b32.xlu1 %v2079_v15, %s1879_s0 }
 0x6ed   : > { %1042 = vrot.lane.b32.xlu0 %v2084_v19, %s1877_s12 }
 0x6f3   : > { %1138 = vrot.lane.b32.xlu1 %v2079_v15, %s1878_s30 }
 0x73b   : > { %v988_v20 = vpop.xlane.xlu2 %987 }
 0x73c   : > { %v894_v21 = vpop.xlane.xlu0 %893  ;;  %1606 = vrcp.f32 %v988_v20 }
 0x742   : > { %v1607_v25 = vpop.eup %1606 }
 0x743   : > { %v998_v22 = vpop.permute.xlu2 %997  ;;  %v994_v27 = vmul.f32 %v1607_v25, %v1599_v6 }
 0x744   : > { %v1003_v23 = vsel %vm530_vm2, %v998_v22, 0  ;;  %v991_v24 = vpop.xlane.xlu0 %990 }
 0x745   : > { %1608 = vrcp.f32 %v991_v24  ;;  %1012 = vmatpush.bf16.msra.mxu0 %v1003_v23  ;;  %v897_v29 = vpop.xlane.xlu1 %896 }
 0x746   : > { %1610 = vrcp.f32 %v897_v29 }
 0x747   : > { %1612 = vrcp.f32 %v894_v21 }
 0x74b   : > { %v1609_v26 = vpop.eup %1608  ;;  %v1137_v51 = vpop.permute.xlu2 %1136 }
 0x74c   : > { %v995_v28 = vmul.f32 %v1609_v26, %v1603_v12  ;;  %v1611_v32 = vpop.eup %1610 }
 0x74d   : > { %v1613_v34 = vpop.eup %1612  ;;  %v901_v36 = vmul.f32 %v1611_v32, %v1605_v13 }
 0x74e   : > { %v996_v19 = vpack.c.bf16 %v995_v28, %v994_v27  ;;  %v900_v40 = vmul.f32 %v1613_v34, %v1601_v7 }
 0x750   : > { %1440 = vmatmul.msk.bf16.vlgmr.msra.gmra.mxu0 %vm478_vm1, %v996_v19  ;;  %v902_v42 = vpack.c.bf16 %v901_v36, %v900_v40 }
 0x757   : > { %v1045_v30 = vpop.permute.xlu0 %1044 }
 0x758   : > { %v1050_v31 = vsel %vm478_vm1, %v1045_v30, 0 }
 0x759   : > { %1059 = vmatpush.bf16.xpose.msrb.mxu3 %v1050_v31 }
 0x75d   : > { %v904_v37 = vpop.permute.xlu1 %903 }
 0x75e   : > { %v909_v41 = vsel %vm530_vm2, %v904_v37, 0 }
 0x75f   : > { %918 = vmatpush.bf16.msrb.mxu1 %v909_v41  ;;  %v1043_v54 = vpop.permute.xlu0 %1042 }
 0x762   : > { %1437 = vmatmul.msk.bf16.vlgmr.msrb.gmra.mxu1 %vm478_vm1, %v902_v42 }
 0x763   : > { %1033 = vmatpush.bf16.msra.mxu1 %v1024_v39 }
 0x765   : > { %v1139_v43 = vpop.permute.xlu1 %1138 }
 0x766   : > { %v1144_v44 = vsel %vm478_vm1, %v1139_v43, 0 }
 0x767   : > { %1153 = vmatpush.bf16.xpose.msrb.mxu1 %v1144_v44 }
 0x7cd   : > { %v1014_v46 = vpop.f32.mrf.mxu0 }
 0x7d5   : > { %v1016_v47 = vpop.f32.mrf.mxu0 }
 0x7d6   : > { %v1019_v48 = vpack.c.bf16 %v1016_v47, %v1014_v46 }
 0x7d8   : > { %1441 = vmatmul.msk.bf16.vlgmr.msra.gmra.mxu1 %vm478_vm1, %v1019_v48  ;;  %v389_v48 = vld [vmem:[#allocation10 + $0x1c] sm:$0xf] }
 0x7df   : > { %v920_v50 = vpop.f32.mrf.mxu1 }
 0x7e7   : > { %v922_v52 = vpop.f32.mrf.mxu1 }
 0x7e8   : > { %v925_v53 = vpack.c.bf16 %v922_v52, %v920_v50  ;;  %1445 = vmatmul.msk.bf16.vlgmr.msrb.gmra.mxu1 %vm478_vm1, %v1137_v51  ;;  %v1212_v50 = vsel %vm530_vm2, %v389_v48, 0  ;;  %v388_v51 = vld [vmem:[#allocation10 + $0x18] sm:$0xf] }
 0x7e9   : > { %v1118_v52 = vsel %vm530_vm2, %v388_v51, 0 }
 0x7ea   : > { %1438 = vmatmul.msk.bf16.vlgmr.msra.gmra.mxu3 %vm478_vm1, %v925_v53  ;;  %1127 = vmatpush.bf16.msrb.mxu0 %v1118_v52 }
 0x7fa   : > { %1442 = vmatmul.msk.bf16.vlgmr.msrb.gmra.mxu3 %vm478_vm1, %v1043_v54 }
 0x855   : > { %v1035_v55 = vpop.f32.mrf.mxu1 }
 0x85d   : > { %v1037_v56 = vpop.f32.mrf.mxu1 }
 0x865   : > { %v1155_v35 = vpop.f32.mrf.mxu1 }
 0x866   : > { %v1160_v57 = vmul.f32 0.35355338, %v1155_v35 }
 0x868   : > { %v1162_v58 = vsel %vm478_vm1, %v1160_v57, -inf }
 0x869   : > { %1163 = vmax.xlane.f32.xlu1 %v1162_v58 }
 0x86d   : > { %v941_v59 = vpop.f32.mrf.mxu3  ;;  %v1157_v38 = vpop.f32.mrf.mxu1 }
 0x86e   : > { %v946_v60 = vadd.f32 %v941_v59, %v2151_v45  ;;  %v1161_v61 = vmul.f32 0.35355338, %v1157_v38 }
 0x870   : > { %v1165_v62 = vsel %vm478_vm1, %v1161_v61, -inf  ;;  %v2185_v63 = vadd.f32 %v1035_v55, %v946_v60 }
 0x871   : > { %1166 = vmax.xlane.f32.xlu0 %v1165_v62 }
 0x875   : > { %v943_v0 = vpop.f32.mrf.mxu3 }
 0x876   : > { %v947_v1 = vadd.f32 %v943_v0, %v2154_v49 }
 0x878   : > { %v2188_v2 = vadd.f32 %v1037_v56, %v947_v1 }
 0x87d   : > { %v1061_v3 = vpop.f32.mrf.mxu3 }
 0x87e   : > { %v1066_v4 = vmul.f32 0.35355338, %v1061_v3 }
 0x880   : > { %v1068_v5 = vsel %vm478_vm1, %v1066_v4, -inf }
 0x881   : > { %1069 = vmax.xlane.f32.xlu2 %v1068_v5 }
 0x885   : > { %v1063_v6 = vpop.f32.mrf.mxu3 }
 0x886   : > { %v1067_v7 = vmul.f32 0.35355338, %v1063_v6 }
 0x888   : > { %v1071_v45 = vsel %vm478_vm1, %v1067_v7, -inf }
 0x889   : > { %1072 = vmax.xlane.f32.xlu1 %v1071_v45 }
 0x8dc   : > { %v1164_v8 = vpop.xlane.xlu1 %1163 }
 0x8dd   : > { %v1168_v9 = vsub.f32 %v1160_v57, %v1164_v8 }
 0x8df   : > { %v1170_v10 = vmul.f32 1.442695, %v1168_v9 }
 0x8e1   : > { %1614 = vpow2.f32 %v1170_v10 }
 0x8e4   : > { %v1167_v11 = vpop.xlane.xlu0 %1166 }
 0x8e5   : > { %v1169_v12 = vsub.f32 %v1161_v61, %v1167_v11 }
 0x8e7   : > { %v1615_v13 = vpop.eup %1614  ;;  %v1172_v49 = vmul.f32 1.442695, %v1169_v12 }
 0x8e8   : > { %v1174_v14 = vsel %vm478_vm1, %v1615_v13, 0.0 }
 0x8e9   : > { %1616 = vpow2.f32 %v1172_v49  ;;  %1175 = vadd.xlane.f32.xlu2 %v1174_v14 }
 0x8ef   : > { %v1617_v16 = vpop.eup %1616 }
 0x8f0   : > { %v1177_v17 = vsel %vm478_vm1, %v1617_v16, 0.0 }
 0x8f1   : > { %1178 = vadd.xlane.f32.xlu0 %v1177_v17 }
 0x8f4   : > { %v1070_v18 = vpop.xlane.xlu2 %1069 }
 0x8f5   : > { %v1074_v20 = vsub.f32 %v1066_v4, %v1070_v18 }
 0x8f7   : > { %v1076_v21 = vmul.f32 1.442695, %v1074_v20 }
 0x8f9   : > { %1618 = vpow2.f32 %v1076_v21 }
 0x8fc   : > { %v1073_v22 = vpop.xlane.xlu1 %1072 }
 0x8fd   : > { %v1075_v23 = vsub.f32 %v1067_v7, %v1073_v22 }
 0x8ff   : > { %v1619_v24 = vpop.eup %1618  ;;  %v1078_v25 = vmul.f32 1.442695, %v1075_v23 }
 0x900   : > { %v1080_v26 = vsel %vm478_vm1, %v1619_v24, 0.0 }
 0x901   : > { %1620 = vpow2.f32 %v1078_v25  ;;  %1081 = vadd.xlane.f32.xlu1 %v1080_v26 }
 0x905   : > { %1185 = vrot.lane.b32.xlu0 %v2079_v15, %s1880_s8 }
 0x907   : > { %v1621_v27 = vpop.eup %1620 }
 0x908   : > { %v1083_v28 = vsel %vm478_vm1, %v1621_v27, 0.0 }
 0x909   : > { %1084 = vadd.xlane.f32.xlu2 %v1083_v28 }
 0x91a   : > { %1091 = vrot.lane.b32.xlu1 %v2079_v15, %s1881_s29 }
 0x95c   : > { %v1176_v29 = vpop.xlane.xlu2 %1175 }
 0x964   : > { %v1179_v19 = vpop.xlane.xlu0 %1178 }
 0x965   : > { %1622 = vrcp.f32 %v1179_v19 }
 0x966   : > { %1624 = vrcp.f32 %v1176_v29 }
 0x96b   : > { %v1623_v30 = vpop.eup %1622 }
 0x96c   : > { %v1625_v31 = vpop.eup %1624  ;;  %v1183_v32 = vmul.f32 %v1623_v30, %v1617_v16 }
 0x96d   : > { %v1182_v34 = vmul.f32 %v1625_v31, %v1615_v13 }
 0x96f   : > { %v1184_v37 = vpack.c.bf16 %v1183_v32, %v1182_v34 }
 0x974   : > { %v1082_v40 = vpop.xlane.xlu1 %1081 }
 0x977   : > { %v1186_v33 = vpop.permute.xlu0 %1185 }
 0x978   : > { %v1191_v36 = vsel %vm530_vm2, %v1186_v33, 0 }
 0x979   : > { %1200 = vmatpush.bf16.msra.mxu3 %v1191_v36 }
 0x97c   : > { %1446 = vmatmul.msk.bf16.vlgmr.msra.gmra.mxu3 %vm478_vm1, %v1184_v37  ;;  %v1085_v39 = vpop.xlane.xlu2 %1084 }
 0x97d   : > { %1626 = vrcp.f32 %v1085_v39 }
 0x97e   : > { %1628 = vrcp.f32 %v1082_v40 }
 0x983   : > { %v1627_v15 = vpop.eup %1626 }
 0x984   : > { %v1629_v41 = vpop.eup %1628  ;;  %v1089_v42 = vmul.f32 %v1627_v15, %v1621_v27 }
 0x985   : > { %v1088_v44 = vmul.f32 %v1629_v41, %v1619_v24 }
 0x987   : > { %v1090_v47 = vpack.c.bf16 %v1089_v42, %v1088_v44 }
 0x98c   : > { %v1092_v43 = vpop.permute.xlu1 %1091 }
 0x98d   : > { %v1097_v46 = vsel %vm530_vm2, %v1092_v43, 0 }
 0x98e   : > { %1106 = vmatpush.bf16.msrb.mxu2 %v1097_v46 }
 0x991   : > { %1443 = vmatmul.msk.bf16.vlgmr.msrb.gmra.mxu2 %vm478_vm1, %v1090_v47 }
 0x992   : > { %1221 = vmatpush.bf16.msra.mxu2 %v1212_v50 }
 0x9ff   : > { %v1202_v53 = vpop.f32.mrf.mxu3 }
 0xa07   : > { %v1204_v54 = vpop.f32.mrf.mxu3 }
 0xa08   : > { %v1207_v55 = vpack.c.bf16 %v1204_v54, %v1202_v53 }
 0xa0a   : > { %1447 = vmatmul.msk.bf16.vlgmr.msra.gmra.mxu2 %vm478_vm1, %v1207_v55 }
 0xa14   : > { %v1108_v56 = vpop.f32.mrf.mxu2 }
 0xa1c   : > { %v1110_v35 = vpop.f32.mrf.mxu2 }
 0xa1d   : > { %v1113_v57 = vpack.c.bf16 %v1110_v35, %v1108_v56 }
 0xa1f   : > { %1444 = vmatmul.msk.bf16.vlgmr.msrb.gmra.mxu0 %vm478_vm1, %v1113_v57 }
 0xa8d   : > { %v1223_v58 = vpop.f32.mrf.mxu2 }
 0xa95   : > { %v1225_v0 = vpop.f32.mrf.mxu2 }
 0xa9c   : > { %v1129_v59 = vpop.f32.mrf.mxu0 }
 0xa9d   : > { %v1134_v38 = vadd.f32 %v1129_v59, %v2185_v63 }
 0xa9f   : > { %v1228_v60 = vadd.f32 %v1223_v58, %v1134_v38 }
 0xaa1   : > { %1230 = vst.msk [vmem:[%s359_s20] sm:$0xff] %vm414_vm0, %v1228_v60 }
 0xaa4   : > { %v1131_v61 = vpop.f32.mrf.mxu0 }
 0xaa5   : > { %v1135_v62 = vadd.f32 %v1131_v61, %v2188_v2 }
 0xaa7   : > { %v1229_v1 = vadd.f32 %v1225_v0, %v1135_v62 }
 0xaa9   : > { %1231 = vst.msk [vmem:[%s359_s20 + $0x8] sm:$0xff] %vm414_vm0, %v1229_v1 }
 0xaaa   : > { %1807 = shalt.err (!%p1804_p9)
}
 0xaab   : > { %s1882_s4 = smov 128  }
 0xaac   : > { %1479 = dma.vmem_to_hbm [thread:$0]  (%p2001_p7), %s1246_s17, 256, %s1248_s10, %s1233_s25, %s1882_s4, %s1882_s4, %s1880_s8  }
 0xaad PF: > { %s1262_s26 = sand.u32 1, %s1846_s21   ;;  %p2271_p12 = scmp.ge.s32.totalorder %s1858_s24, 2 }
 0xaae   : > { %s1263_s12 = scalar_lea.sflag [#allocation4], %s1262_s26 }
 0xaaf   : > { %p1499_p13 = pnand %p2271_p12, %p1953_p6 }
 0xab1   : > { %p1500_p0 = pneg %p1499_p13 }
 0xab3   : > { %1841 = dma.done.wait (%p1500_p0), %s1263_s12, 256  }
 0xab4   : > { %1843 = vsyncadd (%p1500_p0), %s1263_s12, 4294967040  ;;  %s2272_s30 = sld [smem:[#allocation17_spill]]  ;;  %p23_p3 = scmp.ge.s32.totalorder %s1985_s7, 4  }
 0xab5   : > { %s2273_s23 = sld [smem:[#allocation18_spill]]  ;;  %s2274_s21 = smov %s1850_s22 }
 0xab6   : > { %s2276_s24 = smov %s1985_s7  ;;  %25 = sbr.rel (!%p23_p3) target bundleno = 13 (0xd), region = 114 }
 0xaba   : > { %s2275_s22 = smov %s2272_s30 }
 0xabb   :  { %1269 = vsyncpa [#allocation3], 1 }
 0xabc   :  { %1271 = vsyncpa [#allocation3 + $0x1], 1 }
 0xabd   :  { %1272 = vsyncpa [#allocation6], 1 }
 0xabe   :  { %1274 = vsyncpa [#allocation6 + $0x1], 1 }
 0xabf   :  { %1275 = vsyncpa [#allocation9], 1 }
 0xac0   :  { %1276 = vsyncpa [#allocation4], 1 }
 0xac1   :  { %1278 = vsyncpa [#allocation4 + $0x1], 1 }

</bundles_post_ra>
